<compile_context>
chip_gen: v7x
topology: tpu7x:2x2x1
jax: 0.10.0
libtpu: 0.0.40
codegen_flags: <defaults>
</compile_context>

<pallas_src>
import functools

import numpy as np
import jax
import jax.numpy as jnp
from jax.experimental import pallas as pl
from jax.experimental.pallas import tpu as pltpu


# ----------------------------------------------------------------------------
# Fused VQ kernel: one (D, THW) tile of positions -> quantized tile + partial
# SSE + per-codeword assignment counts.
# ----------------------------------------------------------------------------
def _vq_kernel(x_ref, wb_ref, wt_ref, wsq_ref, q_ref, sse_ref, cnt_ref, *,
               hw, ragged):
    x = x_ref[...]                                          # (D, THW) f32
    d, thw = x.shape

    # scores[k, j] = w_k . x_j   (bf16 MXU matmul, f32 accumulation)
    scores = jnp.dot(wb_ref[...], x.astype(jnp.bfloat16),
                     preferred_element_type=jnp.float32)    # (K, THW)
    # argmin_k ||x_j - w_k||^2  ==  argmax_k (2 x_j.w_k - ||w_k||^2)
    neg = 2.0 * scores - wsq_ref[...]                       # (K, THW)
    K = neg.shape[0]

    ki = jax.lax.broadcasted_iota(jnp.int32, (K, thw), 0)   # codeword ids
    best = jnp.max(neg, axis=0, keepdims=True)              # (1, THW)
    # first-occurrence tie-break, matching torch.argmax(-distances, 1)
    idx = jnp.min(jnp.where(neg >= best, ki, K), axis=0, keepdims=True)
    onehot = (ki == idx).astype(jnp.float32)                # (K, THW), exact 0/1

    # quantized columns: q[:, j] = w_{idx_j}  (exact f32 selection matmul)
    q = jnp.dot(wt_ref[...], onehot, preferred_element_type=jnp.float32)
    q_ref[...] = q                                          # (D, THW)

    diff = q - x
    if ragged:                                              # mask OOB tail columns
        j = pl.program_id(1)
        col = j * thw + jax.lax.broadcasted_iota(jnp.int32, (1, thw), 1)
        valid = col < hw                                    # (1, THW) bool
        diff = jnp.where(valid, diff, 0.0)
        onehot = jnp.where(valid, onehot, 0.0)

    sq = diff * diff
    sse = jnp.sum(jnp.sum(sq, axis=0, keepdims=True), axis=1, keepdims=True)
    sse_ref[...] = sse                                      # (1, 1)
    cnt_ref[...] = jnp.sum(onehot, axis=1, keepdims=True)   # (K, 1)


# ----------------------------------------------------------------------------
# Wrapper: NCHW in/out, returns (output_quantized, loss, perplexity)
# ----------------------------------------------------------------------------
def vector_quantizer_forward(inputs, embeddings, commitment_cost=0.25):
    N, C, H, W = inputs.shape
    Kn, D = embeddings.shape
    assert C == D, "channel dim must equal embedding_dim"
    HW = H * W
    M = N * HW

    # channels-as-sublane slab (N, D, HW): a FREE reshape, no transpose.
    x3 = inputs.reshape(N, D, HW).astype(jnp.float32)

    # --- tile selection (lane axis = spatial positions) ----------------------
    if HW % 128 == 0:
        THW = min(HW, 2048)
        while HW % THW:          # largest multiple of 128 that divides HW
            THW -= 128
        # keep >= 2 grid steps so dual-TensorCore chips (v7x) use both cores
        if N == 1 and HW // THW < 2 and THW % 256 == 0:
            THW //= 2
        ragged = False
    elif HW <= 3072:
        THW = HW                 # whole row in one block (full-dim block is legal)
        ragged = False
    else:
        THW = 2048               # ragged tail masked in-kernel
        ragged = True
    J = pl.cdiv(HW, THW)

    w = embeddings.astype(jnp.float32)                       # (K, D)
    wt = w.T                                                 # (D, K) f32 (selection)
    wb = w.astype(jnp.bfloat16)                              # (K, D) bf16 (scores)
    wsq = jnp.sum(w * w, axis=1).reshape(Kn, 1)              # (K, 1)

    cost = pl.CostEstimate(
        flops=int(4 * M * D * Kn),
        transcendentals=0,
        bytes_accessed=int(2 * M * D * 4 + Kn * D * (4 + 4 + 2) + Kn * 4),
    )

    q3, sse_p, cnt_p = pl.pallas_call(
        functools.partial(_vq_kernel, hw=HW, ragged=ragged),
        out_shape=(
            jax.ShapeDtypeStruct((N, D, HW), jnp.float32),   # quantized slab
            jax.ShapeDtypeStruct((N, J, 1, 1), jnp.float32), # per-tile SSE
            jax.ShapeDtypeStruct((N, J, Kn, 1), jnp.float32) # per-tile counts
        ),
        grid=(N, J),
        in_specs=[
            pl.BlockSpec((None, D, THW), lambda n, j: (n, 0, j)),
            pl.BlockSpec((Kn, D), lambda n, j: (0, 0)),
            pl.BlockSpec((D, Kn), lambda n, j: (0, 0)),
            pl.BlockSpec((Kn, 1), lambda n, j: (0, 0)),
        ],
        out_specs=(
            pl.BlockSpec((None, D, THW), lambda n, j: (n, 0, j)),
            pl.BlockSpec((None, None, 1, 1), lambda n, j: (n, j, 0, 0)),
            pl.BlockSpec((None, None, Kn, 1), lambda n, j: (n, j, 0, 0)),
        ),
        compiler_params=pltpu.CompilerParams(
            dimension_semantics=("parallel", "parallel")),
        cost_estimate=cost,
    )(x3, wb, wt, wsq)

    quantized = q3.reshape(N, D, H, W)                       # free reshape back

    # straight-through estimator (forward value == quantized)
    output_quantized = inputs + jax.lax.stop_gradient(quantized - inputs)

    # tiny scalar finalize in XLA
    mse = jnp.sum(sse_p) / jnp.float32(M * D)     # F.mse_loss(quantized, inputs)
    e_latent_loss = mse                           # .detach() is gradient-only
    q_latent_loss = mse
    loss = q_latent_loss + commitment_cost * e_latent_loss

    counts = jnp.sum(cnt_p, axis=(0, 1, 3))                  # (K,)
    avg_probs = counts / jnp.float32(M)
    perplexity = jnp.exp(-jnp.sum(avg_probs * jnp.log(avg_probs + 1e-10)))
    return output_quantized, loss, perplexity


# ----------------------------------------------------------------------------
# Pure-JAX references of the PyTorch forward (for correctness check)
# ----------------------------------------------------------------------------
def _vq_reference(inputs, embeddings, commitment_cost=0.25, scores_in_bf16=False):
    N, C, H, W = inputs.shape
    Kn, D = embeddings.shape
    x = inputs.transpose(0, 2, 3, 1).reshape(-1, D)
    if scores_in_bf16:
        # same bf16 nearest-codeword search as the kernel (tie-consistent)
        s = jnp.dot(x.astype(jnp.bfloat16), embeddings.astype(jnp.bfloat16).T,
                    preferred_element_type=jnp.float32)
        neg = 2.0 * s - jnp.sum(embeddings * embeddings, axis=1)[None, :]
        idx = jnp.argmax(neg, axis=1)
    else:
        d = jnp.sum(jnp.square(x[:, None, :] - embeddings[None, :, :]), axis=-1)
        idx = jnp.argmin(d, axis=1)
    q = embeddings[idx]
    mse = jnp.mean(jnp.square(q - x))
    loss = (1.0 + commitment_cost) * mse
    onehot = jax.nn.one_hot(idx, Kn, dtype=jnp.float32)
    avg = jnp.mean(onehot, axis=0)
    perp = jnp.exp(-jnp.sum(avg * jnp.log(avg + 1e-10)))
    out_q = (x + (q - x)).reshape(N, H, W, D).transpose(0, 3, 1, 2)
    return out_q, loss, perp


if __name__ == "__main__":
    key = jax.random.PRNGKey(0)
    kx, kw = jax.random.split(key)

    # module defaults: embedding_dim = 128, num_embeddings = 128
    N, D, H, W = 2, 128, 16, 16
    K = 128
    x = jax.random.normal(kx, (N, D, H, W), jnp.float32)
    emb = jax.random.normal(kw, (K, D), jnp.float32)          # nn.Embedding ~ N(0,1)

    fwd = jax.jit(vector_quantizer_forward)
    out_q, loss, perp = fwd(x, emb)
    jax.block_until_ready((out_q, loss, perp))

    # exact-f32 reference of the PyTorch forward
    q_ref, loss_ref, perp_ref = _vq_reference(x, emb)
    # tie-consistent reference (same bf16 score path as the kernel, so
    # near-tie codeword choices agree element-wise)
    q_tie, loss_tie, perp_tie = _vq_reference(x, emb, scores_in_bf16=True)

    assert out_q.shape == x.shape
    np.testing.assert_allclose(np.asarray(out_q), np.asarray(q_tie),
                               rtol=1e-3, atol=1e-3)
    np.testing.assert_allclose(float(loss), float(loss_tie), rtol=1e-3, atol=1e-3)
    np.testing.assert_allclose(float(perp), float(perp_tie), rtol=1e-3, atol=1e-3)
    # vs. exact fp32 PyTorch math: loss is insensitive to bf16 near-tie flips;
    # perplexity can move by ~1 count per flipped position, so allow 5%.
    np.testing.assert_allclose(float(loss), float(loss_ref), rtol=1e-3, atol=1e-3)
    np.testing.assert_allclose(float(perp), float(perp_ref), rtol=5e-2, atol=5e-2)
    assert np.isfinite(float(loss)) and np.isfinite(float(perp))
    print("KERNEL_OK")
</pallas_src>

<mosaic_0001>
module attributes {stable_mosaic.version = 11 : i64} {
  func.func @_vq_kernel(%arg0: i32, %arg1: i32, %arg2: memref<1x128x256xf32, #tpu.memory_space<vmem>>, %arg3: memref<128x128xbf16, #tpu.memory_space<vmem>>, %arg4: memref<128x128xf32, #tpu.memory_space<vmem>>, %arg5: memref<128x1xf32, #tpu.memory_space<vmem>>, %arg6: memref<1x128x256xf32, #tpu.memory_space<vmem>>, %arg7: memref<1x1x1x1xf32, #tpu.memory_space<vmem>>, %arg8: memref<1x1x128x1xf32, #tpu.memory_space<vmem>>) attributes {dimension_semantics = [#tpu.dimension_semantics<parallel>, #tpu.dimension_semantics<parallel>], iteration_bounds = array<i64: 2, 1>, scalar_prefetch = 0 : i64, scratch_operands = 0 : i64, tpu.core_type = #tpu.core_type<tc>, window_params = [{transform_indices = @transform_0, window_bounds = array<i64: 1, 128, 256>}, {pipeline_mode = #tpu.pipeline_mode<synchronous>, transform_indices = @transform_1, window_bounds = array<i64: 128, 128>}, {pipeline_mode = #tpu.pipeline_mode<synchronous>, transform_indices = @transform_2, window_bounds = array<i64: 128, 128>}, {pipeline_mode = #tpu.pipeline_mode<synchronous>, transform_indices = @transform_3, window_bounds = array<i64: 128, 1>}, {transform_indices = @transform_4, window_bounds = array<i64: 1, 128, 256>}, {transform_indices = @transform_5, window_bounds = array<i64: 1, 1, 1, 1>}, {transform_indices = @transform_6, window_bounds = array<i64: 1, 1, 128, 1>}]} {
    %c0 = arith.constant 0 : index
    %c0_0 = arith.constant 0 : index
    %c0_1 = arith.constant 0 : index
    %0 = vector.load %arg2[%c0, %c0_0, %c0_1] : memref<1x128x256xf32, #tpu.memory_space<vmem>>, vector<1x128x256xf32>
    %1 = vector.shape_cast %0 : vector<1x128x256xf32> to vector<128x256xf32>
    %c0_2 = arith.constant 0 : index
    %c0_3 = arith.constant 0 : index
    %2 = vector.load %arg3[%c0_2, %c0_3] : memref<128x128xbf16, #tpu.memory_space<vmem>>, vector<128x128xbf16>
    %3 = arith.truncf %1 : vector<128x256xf32> to vector<128x256xbf16>
    %cst = arith.constant dense<0.000000e+00> : vector<128x256xf32>
    %4 = tpu.matmul %2, %3, %cst {dimension_numbers = #tpu.dot_dimension_numbers<[1], [0], [0], [1], [0, 0, 1, 1], [], []>} : vector<128x128xbf16>, vector<128x256xbf16>, vector<128x256xf32> -> vector<128x256xf32>
    %cst_4 = arith.constant 2.000000e+00 : f32
    %5 = vector.broadcast %cst_4 : f32 to vector<128x256xf32>
    %6 = arith.mulf %5, %4 : vector<128x256xf32>
    %c0_5 = arith.constant 0 : index
    %c0_6 = arith.constant 0 : index
    %7 = vector.load %arg5[%c0_5, %c0_6] : memref<128x1xf32, #tpu.memory_space<vmem>>, vector<128x1xf32>
    %8 = vector.broadcast %7 : vector<128x1xf32> to vector<128x256xf32>
    %9 = arith.subf %6, %8 : vector<128x256xf32>
    %10 = tpu.iota {dimensions = array<i32: 0>} : vector<128x256xi32>
    %cst_7 = arith.constant dense<0xFF800000> : vector<256xf32>
    %11 = vector.multi_reduction <maximumf>, %9, %cst_7 [0] : vector<128x256xf32> to vector<256xf32>
    %12 = vector.shape_cast %11 : vector<256xf32> to vector<1x256xf32>
    %13 = vector.broadcast %12 : vector<1x256xf32> to vector<128x256xf32>
    %14 = arith.cmpf oge, %9, %13 : vector<128x256xf32>
    %c128_i32 = arith.constant 128 : i32
    %15 = vector.broadcast %c128_i32 : i32 to vector<128x256xi32>
    %16 = arith.select %14, %10, %15 : vector<128x256xi1>, vector<128x256xi32>
    %cst_8 = arith.constant dense<2147483647> : vector<256xi32>
    %17 = vector.multi_reduction <minsi>, %16, %cst_8 [0] : vector<128x256xi32> to vector<256xi32>
    %18 = vector.shape_cast %17 : vector<256xi32> to vector<1x256xi32>
    %19 = vector.broadcast %18 : vector<1x256xi32> to vector<128x256xi32>
    %20 = arith.cmpi eq, %10, %19 : vector<128x256xi32>
    %21 = arith.extui %20 : vector<128x256xi1> to vector<128x256xi32>
    %22 = arith.sitofp %21 : vector<128x256xi32> to vector<128x256xf32>
    %c0_9 = arith.constant 0 : index
    %c0_10 = arith.constant 0 : index
    %23 = vector.load %arg4[%c0_9, %c0_10] : memref<128x128xf32, #tpu.memory_space<vmem>>, vector<128x128xf32>
    %cst_11 = arith.constant dense<0.000000e+00> : vector<128x256xf32>
    %24 = tpu.matmul %23, %22, %cst_11 {dimension_numbers = #tpu.dot_dimension_numbers<[1], [0], [0], [1], [0, 0, 1, 1], [], []>} : vector<128x128xf32>, vector<128x256xf32>, vector<128x256xf32> -> vector<128x256xf32>
    %c0_12 = arith.constant 0 : index
    %c0_13 = arith.constant 0 : index
    %c0_14 = arith.constant 0 : index
    %25 = vector.load %arg6[%c0_12, %c0_13, %c0_14] : memref<1x128x256xf32, #tpu.memory_space<vmem>>, vector<1x128x256xf32>
    %26 = vector.shape_cast %25 : vector<1x128x256xf32> to vector<128x256xf32>
    %27 = vector.shape_cast %24 : vector<128x256xf32> to vector<1x128x256xf32>
    tpu.vector_store %arg6[%c0_12, %c0_13, %c0_14], %27 {strides = array<i32>} : memref<1x128x256xf32, #tpu.memory_space<vmem>>, vector<1x128x256xf32>,
    %28 = arith.subf %24, %1 : vector<128x256xf32>
    %29 = arith.mulf %28, %28 : vector<128x256xf32>
    %cst_15 = arith.constant dense<0.000000e+00> : vector<256xf32>
    %30 = vector.multi_reduction <add>, %29, %cst_15 [0] : vector<128x256xf32> to vector<256xf32>
    %31 = vector.shape_cast %30 : vector<256xf32> to vector<1x256xf32>
    %cst_16 = arith.constant dense<0.000000e+00> : vector<1xf32>
    %32 = vector.multi_reduction <add>, %31, %cst_16 [1] : vector<1x256xf32> to vector<1xf32>
    %33 = vector.shape_cast %32 : vector<1xf32> to vector<1x1xf32>
    %c0_17 = arith.constant 0 : index
    %c0_18 = arith.constant 0 : index
    %c0_19 = arith.constant 0 : index
    %c0_20 = arith.constant 0 : index
    %34 = vector.load %arg7[%c0_17, %c0_18, %c0_19, %c0_20] : memref<1x1x1x1xf32, #tpu.memory_space<vmem>>, vector<1x1x1x1xf32>
    %35 = vector.shape_cast %34 : vector<1x1x1x1xf32> to vector<1x1xf32>
    %36 = vector.shape_cast %33 : vector<1x1xf32> to vector<1x1x1x1xf32>
    tpu.vector_store %arg7[%c0_17, %c0_18, %c0_19, %c0_20], %36 {strides = array<i32>} : memref<1x1x1x1xf32, #tpu.memory_space<vmem>>, vector<1x1x1x1xf32>,
    %cst_21 = arith.constant dense<0.000000e+00> : vector<128xf32>
    %37 = vector.multi_reduction <add>, %22, %cst_21 [1] : vector<128x256xf32> to vector<128xf32>
    %38 = vector.shape_cast %37 : vector<128xf32> to vector<128x1xf32>
    %c0_22 = arith.constant 0 : index
    %c0_23 = arith.constant 0 : index
    %c0_24 = arith.constant 0 : index
    %c0_25 = arith.constant 0 : index
    %39 = vector.load %arg8[%c0_22, %c0_23, %c0_24, %c0_25] : memref<1x1x128x1xf32, #tpu.memory_space<vmem>>, vector<1x1x128x1xf32>
    %40 = vector.shape_cast %39 : vector<1x1x128x1xf32> to vector<128x1xf32>
    %41 = vector.shape_cast %38 : vector<128x1xf32> to vector<1x1x128x1xf32>
    tpu.vector_store %arg8[%c0_22, %c0_23, %c0_24, %c0_25], %41 {strides = array<i32>} : memref<1x1x128x1xf32, #tpu.memory_space<vmem>>, vector<1x1x128x1xf32>,
    return
  }
  func.func @transform_0(%arg0: i32, %arg1: i32) -> (i32, i32, i32) {
    %c0_i32 = arith.constant 0 : i32
    %c0_i32_0 = arith.constant 0 : i32
    return %arg0, %c0_i32, %arg1 : i32, i32, i32
  }
  func.func @transform_1(%arg0: i32, %arg1: i32) -> (i32, i32) {
    %c0_i32 = arith.constant 0 : i32
    %c0_i32_0 = arith.constant 0 : i32
    %c0_i32_1 = arith.constant 0 : i32
    return %c0_i32, %c0_i32_0 : i32, i32
  }
  func.func @transform_2(%arg0: i32, %arg1: i32) -> (i32, i32) {
    %c0_i32 = arith.constant 0 : i32
    %c0_i32_0 = arith.constant 0 : i32
    %c0_i32_1 = arith.constant 0 : i32
    return %c0_i32, %c0_i32_0 : i32, i32
  }
  func.func @transform_3(%arg0: i32, %arg1: i32) -> (i32, i32) {
    %c0_i32 = arith.constant 0 : i32
    %c0_i32_0 = arith.constant 0 : i32
    %c0_i32_1 = arith.constant 0 : i32
    return %c0_i32, %c0_i32_0 : i32, i32
  }
  func.func @transform_4(%arg0: i32, %arg1: i32) -> (i32, i32, i32) {
    %c0_i32 = arith.constant 0 : i32
    %c0_i32_0 = arith.constant 0 : i32
    return %arg0, %c0_i32, %arg1 : i32, i32, i32
  }
  func.func @transform_5(%arg0: i32, %arg1: i32) -> (i32, i32, i32, i32) {
    %c0_i32 = arith.constant 0 : i32
    %c0_i32_0 = arith.constant 0 : i32
    %c0_i32_1 = arith.constant 0 : i32
    return %arg0, %arg1, %c0_i32, %c0_i32_0 : i32, i32, i32, i32
  }
  func.func @transform_6(%arg0: i32, %arg1: i32) -> (i32, i32, i32, i32) {
    %c0_i32 = arith.constant 0 : i32
    %c0_i32_0 = arith.constant 0 : i32
    %c0_i32_1 = arith.constant 0 : i32
    return %arg0, %arg1, %c0_i32, %c0_i32_0 : i32, i32, i32, i32
  }
}

</mosaic_0001>

<bundles_post_ra>
// kernel: vector_quantizer_forward.1
= control target key start
LH: loop header
LB: loop body
LE: loop exit
PB: predicated region body
PF: predicated region fallthrough
CT: control target
= control target key end

     0   :  { %s1824_s21 = smov 0   ;;  %s1826_s22 = smov 0   ;;  %s2793_s0 = inlined_call_operand.vmem [shape: f32[2,128,256], index: 0, kind: input, shape index: {}]   ;;  %s2794_s1 = inlined_call_operand.vmem [shape: bf16[128,128], index: 1, kind: input, shape index: {}]   ;;  %s2795_s2 = inlined_call_operand.vmem [shape: f32[128,128], index: 2, kind: input, shape index: {}]   ;;  %s2796_s3 = inlined_call_operand.vmem [shape: f32[128,1], index: 3, kind: input, shape index: {}]   ;;  %s2797_s4 = inlined_call_operand.vmem [shape: f32[2,128,256], index: 4, kind: output, shape index: {0}]   ;;  %s2798_s5 = inlined_call_operand.vmem [shape: f32[2,1,1,1], index: 5, kind: output, shape index: {1}]   ;;  %s2799_s6 = inlined_call_operand.vmem [shape: f32[2,1,128,1], index: 6, kind: output, shape index: {2}]  }
   0x1   :  { %s1828_s23 = smov 0  }
   0x2 LB: > { %s29_s24 = sadd.s32 1, %s1780_s22  ;;  %p1577_p0 = scmp.ge.s32.totalorder %s1784_s23, 1  ;;  %s1784_s23 = sphi %s1828_s23, %s17_s23   ;;  %s1780_s22 = sphi %s1826_s22, %s2825_s22   ;;  %s1776_s21 = sphi %s1824_s21, %s2824_s21  }
   0x3   : > { %p31_p1 = scmp.ge.s32.totalorder %s29_s24, 2  ;;  %p242_p2 = scmp.lt.s32.totalorder %s1784_s23, 3 }
   0x5   : > { %s2827_s24 = smov (%p31_p1, %s29_s24), 0  ;;  %p243_p3 = pnand %p1577_p0, %p242_p2 }
   0x6   : > { %p296_p4 = scmp.lt.s32.totalorder (!%p243_p3), %s1776_s21, 1  ;;  %v1786_v0 = vmov (!%p243_p3), 0   ;;  %v588_v30 = vld [vmem:[%s2796_s3] sm:$0xff] (!%p243_p3)  ;;  %v590_v31 = vld [vmem:[%s2796_s3 + $0x10] sm:$0xff] (!%p243_p3)  ;;  %v589_v34 = vld [vmem:[%s2796_s3 + $0x8] sm:$0xff] (!%p243_p3) }
   0x7   : > { %246 = sbr.rel (%p243_p3) target bundleno = 865 (0x361), region = 36  ;;  %475 = vmatprep.mubr.bf16.mxu0 (!%p243_p3), %v1786_v0  ;;  %1720 = vset.pattern.permute.xlu0 (!%p243_p3), %v1786_v0  ;;  %v591_v35 = vld [vmem:[%s2796_s3 + $0x18] sm:$0xff] (!%p243_p3)  ;;  %v593_v42 = vld [vmem:[%s2796_s3 + $0x28] sm:$0xff] (!%p243_p3)  ;;  %v592_v43 = vld [vmem:[%s2796_s3 + $0x20] sm:$0xff] (!%p243_p3) }
   0x8   : > { %1721 = vset.pattern.permute.xlu1 (!%p243_p3), %v1786_v0  ;;  %606 = vperm.xlu0 (!%p243_p3), %1720, %v588_v30   ;;  %v595_v50 = vld [vmem:[%s2796_s3 + $0x38] sm:$0xff] (!%p243_p3)  ;;  %v594_v51 = vld [vmem:[%s2796_s3 + $0x30] sm:$0xff] (!%p243_p3)  ;;  %v597_v56 = vld [vmem:[%s2796_s3 + $0x48] sm:$0xff] (!%p243_p3) }
   0x9   : > { %616 = vperm.xlu1 (!%p243_p3), %1721, %v590_v31   ;;  %v596_v57 = vld [vmem:[%s2796_s3 + $0x40] sm:$0xff] (!%p243_p3)  ;;  %v599_v60 = vld [vmem:[%s2796_s3 + $0x58] sm:$0xff] (!%p243_p3)  ;;  %v598_v61 = vld [vmem:[%s2796_s3 + $0x50] sm:$0xff] (!%p243_p3) }
   0xa   : > { %v1722_v59 = vld [vmem:[%s2794_s1] sm:$0xff] (!%p243_p3)   ;;  %v601_v62 = vld [vmem:[%s2796_s3 + $0x68] sm:$0xff] (!%p243_p3) }
   0xb   : > { %v600_v63 = vld [vmem:[%s2796_s3 + $0x60] sm:$0xff] (!%p243_p3) }
   0xc   : > { %611 = vperm.xlu0 (!%p243_p3), %1720, %v589_v34  }
   0xd   : > { %621 = vperm.xlu1 (!%p243_p3), %1721, %v591_v35  }
   0xe   : > { %s2829_s21 = smov (!%p296_p4, %s1776_s21), 1 }
   0xf   : > { %s1658_s25 = sshll.u32 %s2829_s21, 8  ;;  %s1660_s13 = sshll.u32 %s2829_s21, 7 }
  0x10   : > { %s1853_s28 = scalar_lea.vmem %s2793_s0, %s1658_s25  ;;  %626 = vperm.xlu0 %1720, %v592_v43   ;;  %s2674_s16 = scalar_lea.vmem %s2799_s6, %s1660_s13 }
  0x11   : > { %v332_v1 = vld [vmem:[%s1853_s28 + $0x8] sm:$0xff]  ;;  %v334_v2 = vld [vmem:[%s1853_s28 + $0x18] sm:$0xff]  ;;  %v331_v3 = vld [vmem:[%s1853_s28] sm:$0xff]  ;;  %631 = vperm.xlu1 %1721, %v593_v42   ;;  %s2711_s19 = scalar_lea.vmem %s2797_s4, %s1658_s25  ;;  %s320_s20 = scalar_lea.vmem %s2798_s5, %s2829_s21 }
  0x12   : > { %v380_v4 = vpack.c.bf16 %v334_v2, %v332_v1  ;;  %v333_v5 = vld [vmem:[%s1853_s28 + $0x10] sm:$0xff]  ;;  %v336_v6 = vld [vmem:[%s1853_s28 + $0x28] sm:$0xff]  ;;  %v338_v7 = vld [vmem:[%s1853_s28 + $0x38] sm:$0xff] }
  0x13   : > { %v379_v8 = vpack.c.bf16 %v333_v5, %v331_v3  ;;  %v382_v9 = vpack.c.bf16 %v338_v7, %v336_v6  ;;  %v335_v10 = vld [vmem:[%s1853_s28 + $0x20] sm:$0xff]  ;;  %v337_v11 = vld [vmem:[%s1853_s28 + $0x30] sm:$0xff]  ;;  %v340_v12 = vld [vmem:[%s1853_s28 + $0x48] sm:$0xff] }
  0x14   : > { %443 = vmatprep.subr.bf16.mxu0 %v380_v4  ;;  %v342_v13 = vld [vmem:[%s1853_s28 + $0x58] sm:$0xff]  ;;  %v381_v14 = vpack.c.bf16 %v337_v11, %v335_v10  ;;  %v339_v16 = vld [vmem:[%s1853_s28 + $0x40] sm:$0xff]  ;;  %v341_v17 = vld [vmem:[%s1853_s28 + $0x50] sm:$0xff]  ;;  %636 = vperm.xlu0 %1720, %v594_v51  }
  0x15   : > { %444 = vmatpush1.bf16.msra.mxu0 %v379_v8  ;;  %v384_v15 = vpack.c.bf16 %v342_v13, %v340_v12  ;;  %v344_v18 = vld [vmem:[%s1853_s28 + $0x68] sm:$0xff]  ;;  %v346_v19 = vld [vmem:[%s1853_s28 + $0x78] sm:$0xff]  ;;  %v383_v20 = vpack.c.bf16 %v341_v17, %v339_v16  ;;  %v343_v22 = vld [vmem:[%s1853_s28 + $0x60] sm:$0xff]  ;;  %641 = vperm.xlu1 %1721, %v595_v50  }
  0x16   : > { %445 = vmatprep.subr.bf16.mxu0 %v382_v9  ;;  %v386_v21 = vpack.c.bf16 %v346_v19, %v344_v18  ;;  %v345_v23 = vld [vmem:[%s1853_s28 + $0x70] sm:$0xff]  ;;  %v348_v24 = vld [vmem:[%s1853_s28 + $0x88] sm:$0xff]  ;;  %v350_v25 = vld [vmem:[%s1853_s28 + $0x98] sm:$0xff] }
  0x17   : > { %v385_v26 = vpack.c.bf16 %v345_v23, %v343_v22  ;;  %v347_v27 = vld [vmem:[%s1853_s28 + $0x80] sm:$0xff]  ;;  %v388_v28 = vpack.c.bf16 %v350_v25, %v348_v24  ;;  %v349_v29 = vld [vmem:[%s1853_s28 + $0x90] sm:$0xff]  ;;  %v352_v32 = vld [vmem:[%s1853_s28 + $0xa8] sm:$0xff] }
  0x18   : > { %v354_v33 = vld [vmem:[%s1853_s28 + $0xb8] sm:$0xff]  ;;  %v387_v36 = vpack.c.bf16 %v349_v29, %v347_v27  ;;  %v351_v38 = vld [vmem:[%s1853_s28 + $0xa0] sm:$0xff]  ;;  %v353_v39 = vld [vmem:[%s1853_s28 + $0xb0] sm:$0xff]  ;;  %646 = vperm.xlu0 %1720, %v596_v57  }
  0x19   : > { %446 = vmatpush1.bf16.msra.mxu0 %v381_v14  ;;  %v390_v37 = vpack.c.bf16 %v354_v33, %v352_v32  ;;  %v356_v40 = vld [vmem:[%s1853_s28 + $0xc8] sm:$0xff]  ;;  %v358_v41 = vld [vmem:[%s1853_s28 + $0xd8] sm:$0xff]  ;;  %v389_v44 = vpack.c.bf16 %v353_v39, %v351_v38  ;;  %v355_v46 = vld [vmem:[%s1853_s28 + $0xc0] sm:$0xff]  ;;  %651 = vperm.xlu1 %1721, %v597_v56   ;;  %v1787_v14 = vmov 0.0  }
  0x1a   : > { %447 = vmatprep.subr.bf16.mxu0 %v384_v15  ;;  %v392_v45 = vpack.c.bf16 %v358_v41, %v356_v40  ;;  %v357_v47 = vld [vmem:[%s1853_s28 + $0xd0] sm:$0xff]  ;;  %v360_v48 = vld [vmem:[%s1853_s28 + $0xe8] sm:$0xff]  ;;  %v362_v49 = vld [vmem:[%s1853_s28 + $0xf8] sm:$0xff]  ;;  %1093 = vmatprep.mubr.f32.mxu1 %v1787_v14 }
  0x1b   : > { %v391_v52 = vpack.c.bf16 %v357_v47, %v355_v46  ;;  %v394_v53 = vpack.c.bf16 %v362_v49, %v360_v48  ;;  %v359_v54 = vld [vmem:[%s1853_s28 + $0xe0] sm:$0xff]  ;;  %v361_v55 = vld [vmem:[%s1853_s28 + $0xf0] sm:$0xff]  ;;  %v1723_v1 = vld [vmem:[%s2794_s1 + $0x8] sm:$0xff]  }
  0x1c   : > { %v393_v58 = vpack.c.bf16 %v361_v55, %v359_v54  ;;  %656 = vperm.xlu0 %1720, %v598_v61   ;;  %v603_v2 = vld [vmem:[%s2796_s3 + $0x78] sm:$0xff]  ;;  %v602_v3 = vld [vmem:[%s2796_s3 + $0x70] sm:$0xff]  ;;  %v1726_v6 = vld [vmem:[%s2794_s1 + $0x20] sm:$0xff]  }
  0x1d   : > { %448 = vmatpush1.bf16.msra.mxu0 %v383_v20  ;;  %661 = vperm.xlu1 %1721, %v599_v60   ;;  %v1724_v4 = vld [vmem:[%s2794_s1 + $0x10] sm:$0xff]   ;;  %v1725_v5 = vld [vmem:[%s2794_s1 + $0x18] sm:$0xff]   ;;  %v1727_v7 = vld [vmem:[%s2794_s1 + $0x28] sm:$0xff]  }
  0x1e   : > { %449 = vmatprep.subr.bf16.mxu0 %v386_v21  ;;  %v1728_v8 = vld [vmem:[%s2794_s1 + $0x30] sm:$0xff]   ;;  %v1729_v9 = vld [vmem:[%s2794_s1 + $0x38] sm:$0xff]  }
  0x20   : > { %666 = vperm.xlu0 %1720, %v600_v63  }
  0x21   : > { %450 = vmatpush1.bf16.msra.mxu0 %v385_v26  ;;  %671 = vperm.xlu1 %1721, %v601_v62  }
  0x22   : > { %451 = vmatprep.subr.bf16.mxu0 %v388_v28 }
  0x24   : > { %676 = vperm.xlu0 %1720, %v602_v3  }
  0x25   : > { %452 = vmatpush1.bf16.msra.mxu0 %v387_v36  ;;  %681 = vperm.xlu1 %1721, %v603_v2  }
  0x26   : > { %453 = vmatprep.subr.bf16.mxu0 %v390_v37 }
  0x29   : > { %454 = vmatpush1.bf16.msra.mxu0 %v389_v44 }
  0x2a   : > { %455 = vmatprep.subr.bf16.mxu0 %v392_v45 }
  0x2d   : > { %456 = vmatpush1.bf16.msra.mxu0 %v391_v52 }
  0x2e   : > { %457 = vmatprep.subr.bf16.mxu0 %v394_v53 }
  0x31   : > { %458 = vmatpush1.bf16.msra.mxu0 %v393_v58 }
  0x34   : > { %476 = vmatmul.mubr.bf16.vlgmr.msra.gmra.mrb[0].mxu0 %v1722_v59 }
  0x35   : > { %485 = vmatprep.mubr.bf16.mxu0 %v1786_v0 }
  0x3c   : > { %486 = vmatmul.mubr.bf16.gmra.mrb[4].mxu0 %v1723_v1 }
  0x3d   : > { %495 = vmatprep.mubr.bf16.mxu0 %v1786_v0 }
  0x44   : > { %496 = vmatmul.mubr.bf16.gmra.mrb[8].mxu0 %v1724_v4 }
  0x45   : > { %505 = vmatprep.mubr.bf16.mxu0 %v1786_v0 }
  0x4c   : > { %506 = vmatmul.mubr.bf16.gmra.mrb[12].mxu0 %v1725_v5 }
  0x4d   : > { %515 = vmatprep.mubr.bf16.mxu0 %v1786_v0 }
  0x54   : > { %516 = vmatmul.mubr.bf16.gmra.mrb[16].mxu0 %v1726_v6 }
  0x55   : > { %525 = vmatprep.mubr.bf16.mxu0 %v1786_v0 }
  0x5c   : > { %526 = vmatmul.mubr.bf16.gmra.mrb[20].mxu0 %v1727_v7 }
  0x5d   : > { %535 = vmatprep.mubr.bf16.mxu0 %v1786_v0 }
  0x64   : > { %536 = vmatmul.mubr.bf16.gmra.mrb[24].mxu0 %v1728_v8 }
  0x65   : > { %545 = vmatprep.mubr.bf16.mxu0 %v1786_v0 }
  0x6c   : > { %546 = vmatmul.mubr.bf16.gmra.mrb[28].mxu0 %v1729_v9 }
  0x87   : > { %v607_v15 = vpop.permute.xlu0 %606 }
  0x88   : > { %v617_v16 = vpop.permute.xlu1 %616 }
  0x8b   : > { %v612_v23 = vpop.permute.xlu0 %611 }
  0x8c   : > { %v622_v31 = vpop.permute.xlu1 %621 }
  0x8f   : > { %v627_v45 = vpop.permute.xlu0 %626 }
  0x90   : > { %v632_v51 = vpop.permute.xlu1 %631 }
  0x93   : > { %v637_v63 = vpop.permute.xlu0 %636 }
  0x94   : > { %v642_v6 = vpop.permute.xlu1 %641 }
 0x107   : > { %v477_v10 = vpop.f32.mrb[0].mxu0 }
 0x108   : > { %v479_v11 = vpop.f32.mrb[1].mxu0  ;;  %v556_v17 = vmul.f32 2.0, %v477_v10 }
 0x109   : > { %v481_v12 = vpop.f32.mrb[2].mxu0  ;;  %v557_v18 = vmul.f32 2.0, %v479_v11 }
 0x10a   : > { %v483_v13 = vpop.f32.mrb[3].mxu0  ;;  %v558_v20 = vmul.f32 2.0, %v481_v12  ;;  %v1967_v26 = vsub.f32 %v556_v17, %v607_v15 }
 0x10b   : > { %v559_v22 = vmul.f32 2.0, %v483_v13  ;;  %v1971_v30 = vsub.f32 %v557_v18, %v607_v15 }
 0x10c   : > { %v1975_v34 = vsub.f32 %v558_v20, %v612_v23 }
 0x10d   : > { %v1981_v37 = vsub.f32 %v559_v22, %v612_v23 }
 0x10f   : > { %v487_v19 = vpop.f32.mrb[4].mxu0 }
 0x110   : > { %v560_v21 = vmul.f32 2.0, %v487_v19  ;;  %v489_v0 = vpop.f32.mrb[5].mxu0  ;;  %v647_v19 = vpop.permute.xlu0 %646 }
 0x111   : > { %v561_v24 = vmul.f32 2.0, %v489_v0  ;;  %v491_v25 = vpop.f32.mrb[6].mxu0 }
 0x112   : > { %v1969_v27 = vsub.f32 %v560_v21, %v617_v16  ;;  %v562_v28 = vmul.f32 2.0, %v491_v25  ;;  %v493_v29 = vpop.f32.mrb[7].mxu0 }
 0x113   : > { %v1973_v32 = vsub.f32 %v561_v24, %v617_v16  ;;  %v563_v33 = vmul.f32 2.0, %v493_v29  ;;  %v652_v24 = vpop.permute.xlu1 %651 }
 0x114   : > { %v733_v35 = vmax.f32 %v1967_v26, %v1969_v27  ;;  %v1979_v36 = vsub.f32 %v562_v28, %v622_v31 }
 0x115   : > { %v754_v38 = vmax.f32 %v1971_v30, %v1973_v32  ;;  %v1985_v39 = vsub.f32 %v563_v33, %v622_v31 }
 0x116   : > { %v734_v40 = vmax.f32 %v1975_v34, %v1979_v36 }
 0x117   : > { %v755_v41 = vmax.f32 %v1981_v37, %v1985_v39  ;;  %v497_v42 = vpop.f32.mrb[8].mxu0 }
 0x118   : > { %v564_v43 = vmul.f32 2.0, %v497_v42  ;;  %v499_v44 = vpop.f32.mrb[9].mxu0 }
 0x119   : > { %v565_v46 = vmul.f32 2.0, %v499_v44  ;;  %v501_v47 = vpop.f32.mrb[10].mxu0  ;;  %v657_v44 = vpop.permute.xlu0 %656 }
 0x11a   : > { %v1991_v48 = vsub.f32 %v564_v43, %v627_v45  ;;  %v566_v49 = vmul.f32 2.0, %v501_v47  ;;  %v503_v50 = vpop.f32.mrb[11].mxu0 }
 0x11b   : > { %v1993_v52 = vsub.f32 %v565_v46, %v627_v45  ;;  %v567_v53 = vmul.f32 2.0, %v503_v50 }
 0x11c   : > { %v735_v54 = vmax.f32 %v733_v35, %v1991_v48  ;;  %v1996_v55 = vsub.f32 %v566_v49, %v632_v51 }
 0x11d   : > { %v756_v56 = vmax.f32 %v754_v38, %v1993_v52  ;;  %v1999_v57 = vsub.f32 %v567_v53, %v632_v51  ;;  %v662_v51 = vpop.permute.xlu1 %661 }
 0x11e   : > { %v736_v58 = vmax.f32 %v734_v40, %v1996_v55 }
 0x11f   : > { %v757_v59 = vmax.f32 %v755_v41, %v1999_v57  ;;  %v507_v60 = vpop.f32.mrb[12].mxu0 }
 0x120   : > { %v568_v61 = vmul.f32 2.0, %v507_v60  ;;  %v509_v62 = vpop.f32.mrb[13].mxu0 }
 0x121   : > { %v569_v1 = vmul.f32 2.0, %v509_v62  ;;  %v511_v2 = vpop.f32.mrb[14].mxu0 }
 0x122   : > { %v2003_v3 = vsub.f32 %v568_v61, %v637_v63  ;;  %v570_v4 = vmul.f32 2.0, %v511_v2  ;;  %v513_v5 = vpop.f32.mrb[15].mxu0 }
 0x123   : > { %v2005_v7 = vsub.f32 %v569_v1, %v637_v63  ;;  %v571_v8 = vmul.f32 2.0, %v513_v5 }
 0x124   : > { %v737_v9 = vmax.f32 %v735_v54, %v2003_v3  ;;  %v2008_v10 = vsub.f32 %v570_v4, %v642_v6  ;;  %v667_v4 = vpop.permute.xlu0 %666 }
 0x125   : > { %v758_v11 = vmax.f32 %v756_v56, %v2005_v7  ;;  %v2011_v12 = vsub.f32 %v571_v8, %v642_v6 }
 0x126   : > { %v738_v13 = vmax.f32 %v736_v58, %v2008_v10 }
 0x127   : > { %v759_v15 = vmax.f32 %v757_v59, %v2011_v12  ;;  %v517_v16 = vpop.f32.mrb[16].mxu0 }
 0x128   : > { %v572_v17 = vmul.f32 2.0, %v517_v16  ;;  %v519_v18 = vpop.f32.mrb[17].mxu0 }
 0x129   : > { %v573_v20 = vmul.f32 2.0, %v519_v18  ;;  %v521_v21 = vpop.f32.mrb[18].mxu0 }
 0x12a   : > { %v2015_v0 = vsub.f32 %v572_v17, %v647_v19  ;;  %v574_v22 = vmul.f32 2.0, %v521_v21  ;;  %v523_v23 = vpop.f32.mrb[19].mxu0 }
 0x12b   : > { %v2017_v25 = vsub.f32 %v573_v20, %v647_v19  ;;  %v575_v28 = vmul.f32 2.0, %v523_v23 }
 0x12c   : > { %v739_v29 = vmax.f32 %v737_v9, %v2015_v0  ;;  %v2020_v31 = vsub.f32 %v574_v22, %v652_v24 }
 0x12d   : > { %v760_v33 = vmax.f32 %v758_v11, %v2017_v25  ;;  %v2023_v35 = vsub.f32 %v575_v28, %v652_v24 }
 0x12e   : > { %v740_v38 = vmax.f32 %v738_v13, %v2020_v31  ;;  %v672_v13 = vpop.permute.xlu1 %671 }
 0x12f   : > { %v761_v40 = vmax.f32 %v759_v15, %v2023_v35  ;;  %v527_v41 = vpop.f32.mrb[20].mxu0 }
 0x130   : > { %v576_v42 = vmul.f32 2.0, %v527_v41  ;;  %v529_v43 = vpop.f32.mrb[21].mxu0 }
 0x131   : > { %v577_v45 = vmul.f32 2.0, %v529_v43  ;;  %v531_v46 = vpop.f32.mrb[22].mxu0 }
 0x132   : > { %v2027_v47 = vsub.f32 %v576_v42, %v657_v44  ;;  %v578_v49 = vmul.f32 2.0, %v531_v46  ;;  %v533_v50 = vpop.f32.mrb[23].mxu0  ;;  %v682_v43 = vpop.permute.xlu1 %681 }
 0x133   : > { %v2029_v53 = vsub.f32 %v577_v45, %v657_v44  ;;  %v579_v54 = vmul.f32 2.0, %v533_v50 }
 0x134   : > { %v741_v56 = vmax.f32 %v739_v29, %v2027_v47  ;;  %v2032_v58 = vsub.f32 %v578_v49, %v662_v51  ;;  %v677_v29 = vpop.permute.xlu0 %676 }
 0x135   : > { %v762_v59 = vmax.f32 %v760_v33, %v2029_v53  ;;  %v2035_v60 = vsub.f32 %v579_v54, %v662_v51 }
 0x136   : > { %v742_v61 = vmax.f32 %v740_v38, %v2032_v58 }
 0x137   : > { %v763_v62 = vmax.f32 %v761_v40, %v2035_v60  ;;  %v537_v63 = vpop.f32.mrb[24].mxu0 }
 0x138   : > { %v580_v1 = vmul.f32 2.0, %v537_v63  ;;  %v539_v2 = vpop.f32.mrb[25].mxu0 }
 0x139   : > { %v581_v5 = vmul.f32 2.0, %v539_v2  ;;  %v541_v6 = vpop.f32.mrb[26].mxu0 }
 0x13a   : > { %v2039_v8 = vsub.f32 %v580_v1, %v667_v4  ;;  %v582_v9 = vmul.f32 2.0, %v541_v6  ;;  %v543_v11 = vpop.f32.mrb[27].mxu0 }
 0x13b   : > { %v2041_v15 = vsub.f32 %v581_v5, %v667_v4  ;;  %v583_v16 = vmul.f32 2.0, %v543_v11 }
 0x13c   : > { %v743_v17 = vmax.f32 %v741_v56, %v2039_v8  ;;  %v2044_v18 = vsub.f32 %v582_v9, %v672_v13 }
 0x13d   : > { %v764_v19 = vmax.f32 %v762_v59, %v2041_v15  ;;  %v2047_v20 = vsub.f32 %v583_v16, %v672_v13 }
 0x13e   : > { %v744_v21 = vmax.f32 %v742_v61, %v2044_v18 }
 0x13f   : > { %v765_v22 = vmax.f32 %v763_v62, %v2047_v20  ;;  %v547_v23 = vpop.f32.mrb[28].mxu0  ;;  %v716_v62 = vlaneseq }
 0x140   : > { %v584_v24 = vmul.f32 2.0, %v547_v23  ;;  %v549_v28 = vpop.f32.mrb[29].mxu0 }
 0x141   : > { %v585_v33 = vmul.f32 2.0, %v549_v28  ;;  %v551_v38 = vpop.f32.mrb[30].mxu0  ;;  %v2063_v5 = vshrl.u32 %v716_v62, 7 }
 0x142   : > { %v2051_v40 = vsub.f32 %v584_v24, %v677_v29  ;;  %v586_v41 = vmul.f32 2.0, %v551_v38  ;;  %v553_v42 = vpop.f32.mrb[31].mxu0 }
 0x143   : > { %v2053_v44 = vsub.f32 %v585_v33, %v677_v29  ;;  %v587_v45 = vmul.f32 2.0, %v553_v42  ;;  %v2066_v16 = vadd.s32 8, %v2063_v5  ;;  %v2078_v23 = vadd.s32 40, %v2063_v5 }
 0x144   : > { %v745_v46 = vmax.f32 %v743_v17, %v2051_v40  ;;  %v2056_v49 = vsub.f32 %v586_v41, %v682_v43  ;;  %v2069_v17 = vadd.s32 16, %v2063_v5  ;;  %v2081_v24 = vadd.s32 48, %v2063_v5 }
 0x145   : > { %v766_v50 = vmax.f32 %v764_v19, %v2053_v44  ;;  %v2059_v51 = vsub.f32 %v587_v45, %v682_v43  ;;  %v2084_v28 = vadd.s32 56, %v2063_v5  ;;  %v2087_v29 = vadd.s32 64, %v2063_v5 }
 0x146   : > { %v746_v54 = vmax.f32 %v744_v21, %v2056_v49  ;;  %v2072_v21 = vadd.s32 24, %v2063_v5  ;;  %v2090_v33 = vadd.s32 72, %v2063_v5  ;;  %v2095_v41 = vadd.s32 80, %v2063_v5 }
 0x147   : > { %v767_v56 = vmax.f32 %v765_v22, %v2059_v51  ;;  %v2075_v22 = vadd.s32 32, %v2063_v5  ;;  %v2098_v42 = vadd.s32 88, %v2063_v5  ;;  %v2101_v43 = vadd.s32 96, %v2063_v5 }
 0x148   : > { %v747_v59 = vmax.f32 %v745_v46, %v746_v54  ;;  %v2136_v46 = vadd.s32 104, %v2063_v5  ;;  %v2142_v54 = vadd.s32 120, %v2063_v5 }
 0x149   : > { %v768_v61 = vmax.f32 %v766_v50, %v767_v56  ;;  %v2139_v50 = vadd.s32 112, %v2063_v5 }
 0x14a   : > { %v748_v63 = vrot.slane %v747_v59, 4 }
 0x14b   : > { %v769_v1 = vrot.slane %v768_v61, 4 }
 0x14c   : > { %v749_v2 = vmax.f32 %v747_v59, %v748_v63 }
 0x14d   : > { %v770_v4 = vmax.f32 %v768_v61, %v769_v1 }
 0x14e   : > { %v750_v6 = vrot.slane %v749_v2, 2 }
 0x14f   : > { %v771_v9 = vrot.slane %v770_v4, 2 }
 0x150   : > { %v751_v11 = vmax.f32 %v749_v2, %v750_v6 }
 0x151   : > { %v772_v13 = vmax.f32 %v770_v4, %v771_v9 }
 0x152   : > { %v752_v19 = vrot.slane %v751_v11, 1 }
 0x153   : > { %v773_v45 = vrot.slane %v772_v13, 1 }
 0x154   : > { %v2092_v38 = vmax.f32 %v751_v11, %v752_v19 }
 0x155   : > { %v2144_v56 = vmax.f32 %v772_v13, %v773_v45 }
 0x156   : > { %vm775_vm0 = vcmp.ge.f32.partialorder %v1967_v26, %v2092_v38  ;;  %vm777_vm1 = vcmp.ge.f32.partialorder %v1975_v34, %v2092_v38  ;;  %vm779_vm2 = vcmp.ge.f32.partialorder %v1969_v27, %v2092_v38  ;;  %vm781_vm3 = vcmp.ge.f32.partialorder %v1979_v36, %v2092_v38 }
 0x157   : > { %vm783_vm4 = vcmp.ge.f32.partialorder %v1991_v48, %v2092_v38  ;;  %vm785_vm5 = vcmp.ge.f32.partialorder %v1996_v55, %v2092_v38  ;;  %vm787_vm6 = vcmp.ge.f32.partialorder %v2003_v3, %v2092_v38  ;;  %vm789_vm7 = vcmp.ge.f32.partialorder %v2008_v10, %v2092_v38 }
 0x158   : > { %vm791_vm8 = vcmp.ge.f32.partialorder %v2015_v0, %v2092_v38  ;;  %vm793_vm9 = vcmp.ge.f32.partialorder %v2020_v31, %v2092_v38  ;;  %vm795_vm10 = vcmp.ge.f32.partialorder %v2027_v47, %v2092_v38  ;;  %vm797_vm11 = vcmp.ge.f32.partialorder %v2032_v58, %v2092_v38 }
 0x159   : > { %vm799_vm12 = vcmp.ge.f32.partialorder %v2039_v8, %v2092_v38  ;;  %vm801_vm13 = vcmp.ge.f32.partialorder %v2044_v18, %v2092_v38  ;;  %vm803_vm14 = vcmp.ge.f32.partialorder %v2051_v40, %v2092_v38  ;;  %vm805_vm15 = vcmp.ge.f32.partialorder %v2056_v49, %v2092_v38 }
 0x15a   : > { %v807_v59 = vsel %vm775_vm0, %v2063_v5, 128  ;;  %v809_v61 = vsel %vm777_vm1, %v2066_v16, 128  ;;  %v811_v62 = vsel %vm779_vm2, %v2069_v17, 128  ;;  %v813_v63 = vsel %vm781_vm3, %v2072_v21, 128 }
 0x15b   : > { %v815_v26 = vsel %vm783_vm4, %v2075_v22, 128  ;;  %v817_v34 = vsel %vm785_vm5, %v2078_v23, 128  ;;  %v819_v27 = vsel %vm787_vm6, %v2081_v24, 128  ;;  %v821_v36 = vsel %vm789_vm7, %v2084_v28, 128 }
 0x15c   : > { %v823_v48 = vsel %vm791_vm8, %v2087_v29, 128  ;;  %v825_v55 = vsel %vm793_vm9, %v2090_v33, 128  ;;  %v827_v3 = vsel %vm795_vm10, %v2095_v41, 128  ;;  %v829_v10 = vsel %vm797_vm11, %v2098_v42, 128 }
 0x15d   : > { %vm839_vm0 = vcmp.lt.s32.totalorder %v807_v59, %v811_v62  ;;  %vm841_vm1 = vcmp.lt.s32.totalorder %v809_v61, %v813_v63  ;;  %vm776_vm2 = vcmp.ge.f32.partialorder %v1971_v30, %v2144_v56  ;;  %vm778_vm3 = vcmp.ge.f32.partialorder %v1981_v37, %v2144_v56 }
 0x15e   : > { %v840_v0 = vsel %vm839_vm0, %v807_v59, %v811_v62  ;;  %v842_v31 = vsel %vm841_vm1, %v809_v61, %v813_v63  ;;  %vm792_vm5 = vcmp.ge.f32.partialorder %v2017_v25, %v2144_v56  ;;  %vm800_vm11 = vcmp.ge.f32.partialorder %v2041_v15, %v2144_v56 }
 0x15f   : > { %vm843_vm6 = vcmp.lt.s32.totalorder %v840_v0, %v815_v26  ;;  %vm845_vm7 = vcmp.lt.s32.totalorder %v842_v31, %v817_v34  ;;  %vm802_vm8 = vcmp.ge.f32.partialorder %v2047_v20, %v2144_v56  ;;  %v831_v9 = vsel %vm799_vm12, %v2101_v43, 128 }
 0x160   : > { %v844_v47 = vsel %vm843_vm6, %v840_v0, %v815_v26  ;;  %v846_v58 = vsel %vm845_vm7, %v842_v31, %v817_v34  ;;  %vm798_vm7 = vcmp.ge.f32.partialorder %v2035_v60, %v2144_v56  ;;  %v833_v11 = vsel %vm801_vm13, %v2136_v46, 128 }
 0x161   : > { %vm847_vm0 = vcmp.lt.s32.totalorder %v844_v47, %v819_v27  ;;  %vm849_vm1 = vcmp.lt.s32.totalorder %v846_v58, %v821_v36  ;;  %v835_v45 = vsel %vm803_vm14, %v2139_v50, 128  ;;  %v837_v59 = vsel %vm805_vm15, %v2142_v54, 128 }
 0x162   : > { %v848_v1 = vsel %vm847_vm0, %v844_v47, %v819_v27  ;;  %v850_v2 = vsel %vm849_vm1, %v846_v58, %v821_v36  ;;  %vm804_vm0 = vcmp.ge.f32.partialorder %v2053_v44, %v2144_v56  ;;  %vm806_vm1 = vcmp.ge.f32.partialorder %v2059_v51, %v2144_v56 }
 0x163   : > { %vm851_vm10 = vcmp.lt.s32.totalorder %v848_v1, %v823_v48  ;;  %vm853_vm9 = vcmp.lt.s32.totalorder %v850_v2, %v825_v55  ;;  %v808_v18 = vsel %vm776_vm2, %v2063_v5, 128  ;;  %v810_v40 = vsel %vm778_vm3, %v2066_v16, 128 }
 0x164   : > { %v852_v4 = vsel %vm851_vm10, %v848_v1, %v823_v48  ;;  %v854_v6 = vsel %vm853_vm9, %v850_v2, %v825_v55  ;;  %vm2808_vm14 = vcmp.ge.f32.partialorder %v1973_v32, %v2144_v56  ;;  %vm2809_vm15 = vcmp.ge.f32.partialorder %v1985_v39, %v2144_v56 }
 0x165   : > { %vm855_vm6 = vcmp.lt.s32.totalorder %v852_v4, %v827_v3  ;;  %vm857_vm4 = vcmp.lt.s32.totalorder %v854_v6, %v829_v10  ;;  %v812_v49 = vsel %vm2808_vm14, %v2069_v17, 128  ;;  %v814_v38 = vsel %vm2809_vm15, %v2072_v21, 128 }
 0x166   : > { %v856_v13 = vsel %vm855_vm6, %v852_v4, %v827_v3  ;;  %v858_v19 = vsel %vm857_vm4, %v854_v6, %v829_v10  ;;  %vm2810_vm3 = vcmp.ge.f32.partialorder %v1993_v52, %v2144_v56  ;;  %vm878_vm4 = vcmp.lt.s32.totalorder %v808_v18, %v812_v49 }
 0x167   : > { %vm859_vm9 = vcmp.lt.s32.totalorder %v856_v13, %v831_v9  ;;  %vm861_vm10 = vcmp.lt.s32.totalorder %v858_v19, %v833_v11  ;;  %v816_v37 = vsel %vm2810_vm3, %v2075_v22, 128  ;;  %vm880_vm6 = vcmp.lt.s32.totalorder %v810_v40, %v814_v38 }
 0x168   : > { %v860_v8 = vsel %vm859_vm9, %v856_v13, %v831_v9  ;;  %v862_v61 = vsel %vm861_vm10, %v858_v19, %v833_v11  ;;  %vm2811_vm9 = vcmp.ge.f32.partialorder %v1999_v57, %v2144_v56  ;;  %v879_v34 = vsel %vm878_vm4, %v808_v18, %v812_v49 }
 0x169   : > { %vm863_vm12 = vcmp.lt.s32.totalorder %v860_v8, %v835_v45  ;;  %vm865_vm13 = vcmp.lt.s32.totalorder %v862_v61, %v837_v59  ;;  %v818_v32 = vsel %vm2811_vm9, %v2078_v23, 128  ;;  %v881_v39 = vsel %vm880_vm6, %v810_v40, %v814_v38 }
 0x16a   : > { %v864_v62 = vsel %vm863_vm12, %v860_v8, %v835_v45  ;;  %v866_v30 = vsel %vm865_vm13, %v862_v61, %v837_v59  ;;  %vm2812_vm10 = vcmp.ge.f32.partialorder %v2005_v7, %v2144_v56  ;;  %vm882_vm12 = vcmp.lt.s32.totalorder %v879_v34, %v816_v37 }
 0x16b   : > { %vm867_vm2 = vcmp.lt.s32.totalorder %v864_v62, %v866_v30  ;;  %v820_v27 = vsel %vm2812_vm10, %v2081_v24, 128  ;;  %vm884_vm13 = vcmp.lt.s32.totalorder %v881_v39, %v818_v32  ;;  %vm2813_vm15 = vcmp.ge.f32.partialorder %v2011_v12, %v2144_v56 }
 0x16c   : > { %v868_v63 = vsel %vm867_vm2, %v864_v62, %v866_v30  ;;  %v822_v52 = vsel %vm2813_vm15, %v2084_v28, 128  ;;  %v883_v36 = vsel %vm882_vm12, %v879_v34, %v816_v37  ;;  %v885_v48 = vsel %vm884_vm13, %v881_v39, %v818_v32 }
 0x16d   : > { %v869_v26 = vrot.slane %v868_v63, 4  ;;  %v824_v57 = vsel %vm792_vm5, %v2087_v29, 128  ;;  %vm886_vm2 = vcmp.lt.s32.totalorder %v883_v36, %v820_v27  ;;  %vm888_vm3 = vcmp.lt.s32.totalorder %v885_v48, %v822_v52 }
 0x16e   : > { %vm2814_vm4 = vcmp.ge.f32.partialorder %v2023_v35, %v2144_v56  ;;  %v887_v10 = vsel %vm886_vm2, %v883_v36, %v820_v27  ;;  %v889_v0 = vsel %vm888_vm3, %v885_v48, %v822_v52  ;;  %vm2815_vm6 = vcmp.ge.f32.partialorder %v2029_v53, %v2144_v56 }
 0x16f   : > { %vm870_vm14 = vcmp.lt.s32.totalorder %v868_v63, %v869_v26  ;;  %v826_v3 = vsel %vm2814_vm4, %v2090_v33, 128  ;;  %v828_v12 = vsel %vm2815_vm6, %v2095_v41, 128  ;;  %vm890_vm9 = vcmp.lt.s32.totalorder %v887_v10, %v824_v57 }
 0x170   : > { %v871_v55 = vsel %vm870_vm14, %v868_v63, %v869_v26  ;;  %vm892_vm10 = vcmp.lt.s32.totalorder %v889_v0, %v826_v3  ;;  %v830_v25 = vsel %vm798_vm7, %v2098_v42, 128  ;;  %v891_v31 = vsel %vm890_vm9, %v887_v10, %v824_v57 }
 0x171   : > { %v872_v7 = vrot.slane %v871_v55, 2  ;;  %v893_v47 = vsel %vm892_vm10, %v889_v0, %v826_v3  ;;  %v832_v35 = vsel %vm800_vm11, %v2101_v43, 128  ;;  %vm894_vm5 = vcmp.lt.s32.totalorder %v891_v31, %v828_v12 }
 0x172   : > { %vm896_vm13 = vcmp.lt.s32.totalorder %v893_v47, %v830_v25  ;;  %v834_v1 = vsel %vm802_vm8, %v2136_v46, 128  ;;  %v895_v2 = vsel %vm894_vm5, %v891_v31, %v828_v12  ;;  %v836_v60 = vsel %vm804_vm0, %v2139_v50, 128 }
 0x173   : > { %vm873_vm12 = vcmp.lt.s32.totalorder %v871_v55, %v872_v7  ;;  %v897_v4 = vsel %vm896_vm13, %v893_v47, %v830_v25  ;;  %vm898_vm7 = vcmp.lt.s32.totalorder %v895_v2, %v832_v35  ;;  %v838_v15 = vsel %vm806_vm1, %v2142_v54, 128 }
 0x174   : > { %v874_v58 = vsel %vm873_vm12, %v871_v55, %v872_v7  ;;  %vm900_vm14 = vcmp.lt.s32.totalorder %v897_v4, %v834_v1  ;;  %v899_v6 = vsel %vm898_vm7, %v895_v2, %v832_v35  ;;  %v1788_v7 = vmov 1.0|1.0  }
 0x175   : > { %v875_v53 = vrot.slane %v874_v58, 1  ;;  %v901_v9 = vsel %vm900_vm14, %v897_v4, %v834_v1  ;;  %vm902_vm11 = vcmp.lt.s32.totalorder %v899_v6, %v836_v60 }
 0x176   : > { %vm904_vm2 = vcmp.lt.s32.totalorder %v901_v9, %v838_v15  ;;  %v903_v20 = vsel %vm902_vm11, %v899_v6, %v836_v60 }
 0x177   : > { %vm876_vm15 = vcmp.lt.s32.totalorder %v874_v58, %v875_v53  ;;  %v905_v11 = vsel %vm904_vm2, %v901_v9, %v838_v15 }
 0x178   : > { %v2306_v13 = vsel %vm876_vm15, %v874_v58, %v875_v53  ;;  %vm906_vm8 = vcmp.lt.s32.totalorder %v903_v20, %v905_v11 }
 0x179   : > { %v907_v19 = vsel %vm906_vm8, %v903_v20, %v905_v11  ;;  %vm917_vm0 = vcmp.eq.s32.totalorder %v2063_v5, %v2306_v13  ;;  %vm919_vm3 = vcmp.eq.s32.totalorder %v2066_v16, %v2306_v13  ;;  %vm921_vm1 = vcmp.eq.s32.totalorder %v2069_v17, %v2306_v13 }
 0x17a   : > { %v908_v44 = vrot.slane %v907_v19, 4  ;;  %vm923_vm6 = vcmp.eq.s32.totalorder %v2072_v21, %v2306_v13  ;;  %vm925_vm9 = vcmp.eq.s32.totalorder %v2075_v22, %v2306_v13  ;;  %vm2800_vm10 = vcmp.eq.s32.totalorder %v2078_v23, %v2306_v13 }
 0x17b   : > { %v1594_v45 = vsel %vm919_vm3, 1.0, %v1787_v14  ;;  %v1592_v59 = vsel %vm917_vm0, 1.0, %v1787_v14  ;;  %v1596_v8 = vsel %vm921_vm1, 1.0, %v1787_v14  ;;  %v1598_v61 = vsel %vm923_vm6, 1.0, %v1787_v14 }
 0x17c   : > { %vm909_vm4 = vcmp.lt.s32.totalorder %v907_v19, %v908_v44  ;;  %v1600_v18 = vsel %vm925_vm9, 1.0, %v1787_v14  ;;  %v1602_v40 = vsel %vm2800_vm10, 1.0, %v1787_v14  ;;  %vm929_vm12 = vcmp.eq.s32.totalorder %v2081_v24, %v2306_v13 }
 0x17d   : > { %v910_v51 = vsel %vm909_vm4, %v907_v19, %v908_v44  ;;  %vm931_vm13 = vcmp.eq.s32.totalorder %v2084_v28, %v2306_v13  ;;  %vm933_vm7 = vcmp.eq.s32.totalorder %v2087_v29, %v2306_v13  ;;  %vm935_vm14 = vcmp.eq.s32.totalorder %v2090_v33, %v2306_v13 }
 0x17e   : > { %v911_v56 = vrot.slane %v910_v51, 2  ;;  %vm2806_vm15 = vcmp.eq.s32.totalorder %v2095_v41, %v2306_v13  ;;  %vm2803_vm11 = vcmp.eq.s32.totalorder %v2098_v42, %v2306_v13  ;;  %vm2801_vm2 = vcmp.eq.s32.totalorder %v2101_v43, %v2306_v13 }
 0x17f   : > { %vm2802_vm8 = vcmp.eq.s32.totalorder %v2136_v46, %v2306_v13  ;;  %vm2805_vm4 = vcmp.eq.s32.totalorder %v2139_v50, %v2306_v13  ;;  %vm2804_vm10 = vcmp.eq.s32.totalorder %v2142_v54, %v2306_v13  ;;  %v1604_v62 = vsel %vm929_vm12, 1.0, %v1787_v14 }
 0x180   : > { %vm912_vm5 = vcmp.lt.s32.totalorder %v910_v51, %v911_v56  ;;  %v1606_v30 = vsel %vm931_vm13, 1.0, %v1787_v14  ;;  %v1608_v63 = vsel %vm933_vm7, 1.0, %v1787_v14  ;;  %v1610_v37 = vsel %vm935_vm14, 1.0, %v1787_v14 }
 0x181   : > { %v913_v49 = vsel %vm912_vm5, %v910_v51, %v911_v56  ;;  %v1612_v26 = vsel %vm2806_vm15, 1.0, %v1787_v14  ;;  %v1614_v32 = vsel %vm2803_vm11, 1.0, %v1787_v14  ;;  %v1616_v34 = vsel %vm2801_vm2, 1.0, %v1787_v14 }
 0x182   : > { %v914_v38 = vrot.slane %v913_v49, 1  ;;  %v2398_v27 = vsel %vm2802_vm8, 1.0, %v1787_v14  ;;  %v2404_v52 = vsel %vm2804_vm10, 1.0, %v1787_v14  ;;  %v2410_v36 = vsel %vm2805_vm4, 1.0, %v1787_v14 }
 0x184   : > { %vm915_vm5 = vcmp.lt.s32.totalorder %v913_v49, %v914_v38 }
 0x185   : > { %v2392_v39 = vsel %vm915_vm5, %v913_v49, %v914_v38 }
 0x186   : > { %vm918_vm5 = vcmp.eq.s32.totalorder %v2063_v5, %v2392_v39  ;;  %vm920_vm2 = vcmp.eq.s32.totalorder %v2066_v16, %v2392_v39  ;;  %vm922_vm8 = vcmp.eq.s32.totalorder %v2069_v17, %v2392_v39  ;;  %vm924_vm11 = vcmp.eq.s32.totalorder %v2072_v21, %v2392_v39 }
 0x187   : > { %vm1661_vm10 = vmpackc.low %vm920_vm2, %vm918_vm5  ;;  %v1595_v48 = vsel %vm920_vm2, 1.0, %v1787_v14  ;;  %v1593_v55 = vsel %vm918_vm5, 1.0, %v1787_v14  ;;  %v1597_v57 = vsel %vm922_vm8, 1.0, %v1787_v14  ;;  %vm926_vm4 = vcmp.eq.s32.totalorder %v2075_v22, %v2392_v39 }
 0x188   : > { %1662 = vmatprep.subr.msk.bf16.mxu1 %vm1661_vm10, %v1788_v7  ;;  %vm1663_vm2 = vmpackc.low %vm919_vm3, %vm917_vm0  ;;  %v1336_v3 = vadd.f32 %v1595_v48, %v1594_v45  ;;  %v1333_v10 = vadd.f32 %v1593_v55, %v1592_v59  ;;  %v1339_v0 = vadd.f32 %v1597_v57, %v1596_v8  ;;  %vm928_vm5 = vcmp.eq.s32.totalorder %v2078_v23, %v2392_v39  ;;  %v1024_v45 = vld [vmem:[%s2795_s2 + $0x58] sm:$0xff]  ;;  %v1025_v59 = vld [vmem:[%s2795_s2 + $0x60] sm:$0xff] }
 0x189   : > { %1664 = vmatpush1.bf16.msk.msra.mxu1 %vm1663_vm2, %v1788_v7  ;;  %vm1665_vm15 = vmpackc.low %vm924_vm11, %vm922_vm8  ;;  %v1599_v12 = vsel %vm924_vm11, 1.0, %v1787_v14  ;;  %v1601_v5 = vsel %vm926_vm4, 1.0, %v1787_v14  ;;  %vm930_vm0 = vcmp.eq.s32.totalorder %v2081_v24, %v2392_v39  ;;  %vm932_vm3 = vcmp.eq.s32.totalorder %v2084_v28, %v2392_v39  ;;  %v1013_v24 = vld [vmem:[%s2795_s2] sm:$0xff]  ;;  %v1014_v28 = vld [vmem:[%s2795_s2 + $0x8] sm:$0xff] }
 0x18a   : > { %1337 = vadd.xlane.f32.xlu0 %v1336_v3  ;;  %1666 = vmatprep.subr.msk.bf16.mxu1 %vm1665_vm15, %v1788_v7  ;;  %v1342_v16 = vadd.f32 %v1599_v12, %v1598_v61  ;;  %v1345_v25 = vadd.f32 %v1601_v5, %v1600_v18  ;;  %v1603_v31 = vsel %vm928_vm5, 1.0, %v1787_v14  ;;  %v1605_v47 = vsel %vm930_vm0, 1.0, %v1787_v14  ;;  %vm1667_vm11 = vmpackc.low %vm923_vm6, %vm921_vm1  ;;  %v1026_v8 = vld [vmem:[%s2795_s2 + $0x68] sm:$0xff]  ;;  %v1027_v61 = vld [vmem:[%s2795_s2 + $0x70] sm:$0xff] }
 0x18b   : > { %1334 = vadd.xlane.f32.xlu1 %v1333_v10  ;;  %v1348_v58 = vadd.f32 %v1603_v31, %v1602_v40  ;;  %v1351_v35 = vadd.f32 %v1605_v47, %v1604_v62  ;;  %vm934_vm10 = vcmp.eq.s32.totalorder %v2087_v29, %v2392_v39  ;;  %vm936_vm15 = vcmp.eq.s32.totalorder %v2090_v33, %v2392_v39  ;;  %vm1669_vm1 = vmpackc.low %vm928_vm5, %vm926_vm4  ;;  %v1015_v29 = vld [vmem:[%s2795_s2 + $0x10] sm:$0xff]  ;;  %v1016_v33 = vld [vmem:[%s2795_s2 + $0x18] sm:$0xff] }
 0x18c   : > { %v1607_v53 = vsel %vm932_vm3, 1.0, %v1787_v14  ;;  %v1609_v1 = vsel %vm934_vm10, 1.0, %v1787_v14  ;;  %vm938_vm8 = vcmp.eq.s32.totalorder %v2095_v41, %v2392_v39  ;;  %vm2807_vm2 = vcmp.eq.s32.totalorder %v2098_v42, %v2392_v39  ;;  %v1028_v18 = vld [vmem:[%s2795_s2 + $0x78] sm:$0xff]  ;;  %v1730_v57 = vld [vmem:[%s1853_s28] sm:$0xff]  ;;  %v1731_v3 = vld [vmem:[%s1853_s28 + $0x8] sm:$0xff] }
 0x18d   : > { %1668 = vmatpush1.bf16.msk.msra.mxu1 %vm1667_vm11, %v1788_v7  ;;  %v1354_v17 = vadd.f32 %v1607_v53, %v1606_v30  ;;  %v1357_v21 = vadd.f32 %v1609_v1, %v1608_v63  ;;  %v1611_v2 = vsel %vm936_vm15, 1.0, %v1787_v14  ;;  %v1613_v4 = vsel %vm938_vm8, 1.0, %v1787_v14  ;;  %v1732_v12 = vld [vmem:[%s1853_s28 + $0x10] sm:$0xff] }
 0x18e   : > { %1340 = vadd.xlane.f32.xlu0 %v1339_v0  ;;  %1670 = vmatprep.subr.msk.bf16.mxu1 %vm1669_vm1, %v1788_v7  ;;  %v1360_v60 = vadd.f32 %v1611_v2, %v1610_v37  ;;  %v1363_v15 = vadd.f32 %v1613_v4, %v1612_v26  ;;  %vm942_vm6 = vcmp.eq.s32.totalorder %v2101_v43, %v2392_v39  ;;  %v1615_v6 = vsel %vm2807_vm2, 1.0, %v1787_v14 }
 0x18f   : > { %1343 = vadd.xlane.f32.xlu1 %v1342_v16  ;;  %vm944_vm4 = vcmp.eq.s32.totalorder %v2136_v46, %v2392_v39  ;;  %v1366_v9 = vadd.f32 %v1615_v6, %v1614_v32  ;;  %v1617_v20 = vsel %vm942_vm6, 1.0, %v1787_v14  ;;  %vm946_vm5 = vcmp.eq.s32.totalorder %v2139_v50, %v2392_v39 }
 0x190   : > { %vm2816_vm11 = vcmp.eq.s32.totalorder %v2078_v23, %v2306_v13  ;;  %v1369_v11 = vadd.f32 %v1617_v20, %v1616_v34  ;;  %vm948_vm2 = vcmp.eq.s32.totalorder %v2142_v54, %v2392_v39  ;;  %v1619_v19 = vsel %vm944_vm4, 1.0, %v1787_v14 }
 0x191   : > { %vm1671_vm1 = vmpackc.low %vm2816_vm11, %vm925_vm9  ;;  %v1621_v44 = vsel %vm946_vm5, 1.0, %v1787_v14  ;;  %v1372_v22 = vadd.f32 %v1619_v19, %v2398_v27  ;;  %v1623_v23 = vsel %vm948_vm2, 1.0, %v1787_v14  ;;  %vm2819_vm11 = vcmp.eq.s32.totalorder %v2098_v42, %v2306_v13 }
 0x192   : > { %1672 = vmatpush1.bf16.msk.msra.mxu1 %vm1671_vm1, %v1788_v7  ;;  %vm1673_vm9 = vmpackc.low %vm932_vm3, %vm930_vm0  ;;  %v2540_v51 = vadd.f32 %v1621_v44, %v2410_v36  ;;  %1346 = vadd.xlane.f32.xlu0 %v1345_v25  ;;  %v1378_v56 = vadd.f32 %v1623_v23, %v2404_v52  ;;  %vm2821_vm1 = vcmp.eq.s32.totalorder %v2136_v46, %v2306_v13  ;;  %v1020_v46 = vld [vmem:[%s2795_s2 + $0x38] sm:$0xff]  ;;  %v1736_v44 = vld [vmem:[%s1853_s28 + $0x30] sm:$0xff] }
 0x193   : > { %1674 = vmatprep.subr.msk.bf16.mxu1 %vm1673_vm9, %v1788_v7  ;;  %1349 = vadd.xlane.f32.xlu1 %v1348_v58  ;;  %vm1675_vm0 = vmpackc.low %vm931_vm13, %vm929_vm12  ;;  %vm2817_vm13 = vcmp.eq.s32.totalorder %v2098_v42, %v2392_v39  ;;  %v1018_v42 = vld [vmem:[%s2795_s2 + $0x28] sm:$0xff]  ;;  %v1733_v25 = vld [vmem:[%s1853_s28 + $0x18] sm:$0xff] }
 0x194   : > { %vm1677_vm3 = vmpackc.low %vm936_vm15, %vm934_vm10  ;;  %vm2818_vm15 = vcmp.eq.s32.totalorder %v2095_v41, %v2306_v13  ;;  %v1017_v41 = vld [vmem:[%s2795_s2 + $0x20] sm:$0xff] }
 0x195   : > { %vm1679_vm12 = vmpackc.low %vm935_vm14, %vm933_vm7 }
 0x196   : > { %1676 = vmatpush1.bf16.msk.msra.mxu1 %vm1675_vm0, %v1788_v7  ;;  %1352 = vadd.xlane.f32.xlu0 %v1351_v35  ;;  %vm1681_vm10 = vmpackc.low %vm2817_vm13, %vm938_vm8  ;;  %vm2820_vm8 = vcmp.eq.s32.totalorder %v2101_v43, %v2306_v13  ;;  %vm2823_vm0 = vcmp.eq.s32.totalorder %v2142_v54, %v2306_v13  ;;  %v1019_v43 = vld [vmem:[%s2795_s2 + $0x30] sm:$0xff]  ;;  %v1022_v54 = vld [vmem:[%s2795_s2 + $0x48] sm:$0xff] }
 0x197   : > { %1678 = vmatprep.subr.msk.bf16.mxu1 %vm1677_vm3, %v1788_v7  ;;  %1355 = vadd.xlane.f32.xlu1 %v1354_v17  ;;  %vm1683_vm7 = vmpackc.low %vm2819_vm11, %vm2818_vm15 }
 0x198   : > { %vm1685_vm14 = vmpackc.low %vm944_vm4, %vm942_vm6  ;;  %vm2822_vm4 = vcmp.eq.s32.totalorder %v2139_v50, %v2306_v13  ;;  %v1021_v50 = vld [vmem:[%s2795_s2 + $0x40] sm:$0xff]  ;;  %v1023_v13 = vld [vmem:[%s2795_s2 + $0x50] sm:$0xff] }
 0x199   : > { %vm1687_vm9 = vmpackc.low %vm2821_vm1, %vm2820_vm8 }
 0x19a   : > { %1680 = vmatpush1.bf16.msk.msra.mxu1 %vm1679_vm12, %v1788_v7  ;;  %1358 = vadd.xlane.f32.xlu0 %v1357_v21  ;;  %vm1689_vm6 = vmpackc.low %vm948_vm2, %vm946_vm5  ;;  %vm1381_vm2 = vcmask 7168   ;;  %v1734_v21 = vld [vmem:[%s1853_s28 + $0x20] sm:$0xff]  ;;  %vm1331_vm5 = vcmask 0  }
 0x19b   : > { %1682 = vmatprep.subr.msk.bf16.mxu1 %vm1681_vm10, %v1788_v7  ;;  %1361 = vadd.xlane.f32.xlu1 %v1360_v60  ;;  %vm1691_vm3 = vmpackc.low %vm2823_vm0, %vm2822_vm4 }
 0x19e   : > { %1684 = vmatpush1.bf16.msk.msra.mxu1 %vm1683_vm7, %v1788_v7  ;;  %1364 = vadd.xlane.f32.xlu0 %v1363_v15  ;;  %v1735_v15 = vld [vmem:[%s1853_s28 + $0x28] sm:$0xff] }
 0x19f   : > { %1686 = vmatprep.subr.msk.bf16.mxu1 %vm1685_vm14, %v1788_v7  ;;  %1367 = vadd.xlane.f32.xlu1 %v1366_v9 }
 0x1a2   : > { %1688 = vmatpush1.bf16.msk.msra.mxu1 %vm1687_vm9, %v1788_v7  ;;  %1370 = vadd.xlane.f32.xlu0 %v1369_v11 }
 0x1a3   : > { %1690 = vmatprep.subr.msk.bf16.mxu1 %vm1689_vm6, %v1788_v7  ;;  %1373 = vadd.xlane.f32.xlu1 %v1372_v22 }
 0x1a6   : > { %1692 = vmatpush1.bf16.msk.msra.mxu1 %vm1691_vm3, %v1788_v7 }
 0x1a7   : > { %1379 = vadd.xlane.f32.xlu1 %v1378_v56 }
 0x1a9   : > { %1094 = vmatmul.mubr.f32.vlgmr.msra.gmra.mrb[0].mxu1 %v1013_v24  ;;  %v1737_v24 = vld [vmem:[%s1853_s28 + $0x38] sm:$0xff] }
 0x1aa   : > { %1099 = vmatprep.mubr.f32.mxu1 %v1787_v14 }
 0x1ad   : > { %1100 = vmatmul.mubr.f32.gmra.mrb[2].mxu1 %v1014_v28 }
 0x1ae   : > { %1105 = vmatprep.mubr.f32.mxu1 %v1787_v14 }
 0x1b1   : > { %1106 = vmatmul.mubr.f32.gmra.mrb[4].mxu1 %v1015_v29 }
 0x1b2   : > { %1111 = vmatprep.mubr.f32.mxu1 %v1787_v14 }
 0x1b5   : > { %1112 = vmatmul.mubr.f32.gmra.mrb[6].mxu1 %v1016_v33 }
 0x1b6   : > { %1117 = vmatprep.mubr.f32.mxu1 %v1787_v14 }
 0x1b9   : > { %1118 = vmatmul.mubr.f32.gmra.mrb[8].mxu1 %v1017_v41 }
 0x1ba   : > { %1123 = vmatprep.mubr.f32.mxu1 %v1787_v14 }
 0x1bd   : > { %1124 = vmatmul.mubr.f32.gmra.mrb[10].mxu1 %v1018_v42 }
 0x1be   : > { %1129 = vmatprep.mubr.f32.mxu1 %v1787_v14 }
 0x1c1   : > { %1130 = vmatmul.mubr.f32.gmra.mrb[12].mxu1 %v1019_v43  ;;  %v1738_v43 = vld [vmem:[%s1853_s28 + $0x40] sm:$0xff] }
 0x1c2   : > { %1135 = vmatprep.mubr.f32.mxu1 %v1787_v14 }
 0x1c5   : > { %1136 = vmatmul.mubr.f32.gmra.mrb[14].mxu1 %v1020_v46 }
 0x1c6   : > { %1141 = vmatprep.mubr.f32.mxu1 %v1787_v14 }
 0x1c9   : > { %1142 = vmatmul.mubr.f32.gmra.mrb[16].mxu1 %v1021_v50 }
 0x1ca   : > { %1147 = vmatprep.mubr.f32.mxu1 %v1787_v14 }
 0x1cd   : > { %1148 = vmatmul.mubr.f32.gmra.mrb[18].mxu1 %v1022_v54 }
 0x1ce   : > { %1153 = vmatprep.mubr.f32.mxu1 %v1787_v14 }
 0x1d1   : > { %1154 = vmatmul.mubr.f32.gmra.mrb[20].mxu1 %v1023_v13  ;;  %v1739_v13 = vld [vmem:[%s1853_s28 + $0x48] sm:$0xff] }
 0x1d2   : > { %1159 = vmatprep.mubr.f32.mxu1 %v1787_v14 }
 0x1d5   : > { %1160 = vmatmul.mubr.f32.gmra.mrb[22].mxu1 %v1024_v45 }
 0x1d6   : > { %1165 = vmatprep.mubr.f32.mxu1 %v1787_v14 }
 0x1d9   : > { %1166 = vmatmul.mubr.f32.gmra.mrb[24].mxu1 %v1025_v59 }
 0x1da   : > { %1171 = vmatprep.mubr.f32.mxu1 %v1787_v14 }
 0x1dd   : > { %1172 = vmatmul.mubr.f32.gmra.mrb[26].mxu1 %v1026_v8 }
 0x1de   : > { %1177 = vmatprep.mubr.f32.mxu1 %v1787_v14 }
 0x1e1   : > { %1178 = vmatmul.mubr.f32.gmra.mrb[28].mxu1 %v1027_v61 }
 0x1e2   : > { %1183 = vmatprep.mubr.f32.mxu1 %v1787_v14 }
 0x1e5   : > { %1184 = vmatmul.mubr.f32.gmra.mrb[30].mxu1 %v1028_v18 }
 0x217   : > { %v1338_v14 = vpop.xlane.xlu0 %1337 }
 0x218   : > { %1383 = vst.msk [vmem:[%s2674_s16 + $0x8] sm:$0xff] %vm1381_vm2, %v1338_v14  ;;  %v1335_v40 = vpop.xlane.xlu1 %1334  ;;  %v1740_v14 = vld [vmem:[%s1853_s28 + $0x50] sm:$0xff] }
 0x219   : > { %1382 = vst.msk [vmem:[%s2674_s16] sm:$0xff] %vm1381_vm2, %v1335_v40 }
 0x21b   : > { %v1341_v49 = vpop.xlane.xlu0 %1340 }
 0x21c   : > { %1384 = vst.msk [vmem:[%s2674_s16 + $0x10] sm:$0xff] %vm1381_vm2, %v1341_v49  ;;  %v1344_v38 = vpop.xlane.xlu1 %1343 }
 0x21d   : > { %1385 = vst.msk [vmem:[%s2674_s16 + $0x18] sm:$0xff] %vm1381_vm2, %v1344_v38 }
 0x21f   : > { %v1347_v62 = vpop.xlane.xlu0 %1346 }
 0x220   : > { %1386 = vst.msk [vmem:[%s2674_s16 + $0x20] sm:$0xff] %vm1381_vm2, %v1347_v62  ;;  %v1350_v30 = vpop.xlane.xlu1 %1349  ;;  %v1741_v62 = vld [vmem:[%s1853_s28 + $0x58] sm:$0xff] }
 0x221   : > { %1387 = vst.msk [vmem:[%s2674_s16 + $0x28] sm:$0xff] %vm1381_vm2, %v1350_v30 }
 0x223   : > { %v1353_v63 = vpop.xlane.xlu0 %1352 }
 0x224   : > { %1388 = vst.msk [vmem:[%s2674_s16 + $0x30] sm:$0xff] %vm1381_vm2, %v1353_v63  ;;  %v1356_v37 = vpop.xlane.xlu1 %1355 }
 0x225   : > { %1389 = vst.msk [vmem:[%s2674_s16 + $0x38] sm:$0xff] %vm1381_vm2, %v1356_v37 }
 0x227   : > { %v1359_v26 = vpop.xlane.xlu0 %1358 }
 0x228   : > { %1390 = vst.msk [vmem:[%s2674_s16 + $0x40] sm:$0xff] %vm1381_vm2, %v1359_v26  ;;  %v1362_v32 = vpop.xlane.xlu1 %1361 }
 0x229   : > { %1391 = vst.msk [vmem:[%s2674_s16 + $0x48] sm:$0xff] %vm1381_vm2, %v1362_v32 }
 0x22b   : > { %v1365_v34 = vpop.xlane.xlu0 %1364 }
 0x22c   : > { %1392 = vst.msk [vmem:[%s2674_s16 + $0x50] sm:$0xff] %vm1381_vm2, %v1365_v34  ;;  %v1368_v39 = vpop.xlane.xlu1 %1367  ;;  %v1742_v34 = vld [vmem:[%s1853_s28 + $0x60] sm:$0xff] }
 0x22d   : > { %1393 = vst.msk [vmem:[%s2674_s16 + $0x58] sm:$0xff] %vm1381_vm2, %v1368_v39 }
 0x22f   : > { %v1371_v27 = vpop.xlane.xlu0 %1370 }
 0x230   : > { %1394 = vst.msk [vmem:[%s2674_s16 + $0x60] sm:$0xff] %vm1381_vm2, %v1371_v27  ;;  %v1374_v52 = vpop.xlane.xlu1 %1373 }
 0x231   : > { %1395 = vst.msk [vmem:[%s2674_s16 + $0x68] sm:$0xff] %vm1381_vm2, %v1374_v52 }
 0x234   : > { %v1380_v36 = vpop.xlane.xlu1 %1379 }
 0x235   : > { %1397 = vst.msk [vmem:[%s2674_s16 + $0x78] sm:$0xff] %vm1381_vm2, %v1380_v36  ;;  %v1743_v36 = vld [vmem:[%s1853_s28 + $0x68] sm:$0xff] }
 0x27c   : > { %v1095_v48 = vpop.f32.mrb[0].mxu1 }
 0x27d   : > { %1190 = vst [vmem:[%s2711_s19] sm:$0xff] %v1095_v48  ;;  %v1097_v55 = vpop.f32.mrb[1].mxu1  ;;  %v1222_v7 = vsub.f32 %v1095_v48, %v1730_v57 }
 0x27e   : > { %1191 = vst [vmem:[%s2711_s19 + $0x8] sm:$0xff] %v1097_v55  ;;  %v1223_v10 = vsub.f32 %v1097_v55, %v1731_v3 }
 0x27f   : > { %v1254_v47 = vmul.f32 %v1222_v7, %v1222_v7 }
 0x280   : > { %v1101_v0 = vpop.f32.mrb[2].mxu1  ;;  %v1255_v35 = vmul.f32 %v1223_v10, %v1223_v10  ;;  %v1744_v10 = vld [vmem:[%s1853_s28 + $0x70] sm:$0xff] }
 0x281   : > { %1192 = vst [vmem:[%s2711_s19 + $0x10] sm:$0xff] %v1101_v0  ;;  %v1224_v5 = vsub.f32 %v1101_v0, %v1732_v12  ;;  %v1103_v16 = vpop.f32.mrb[3].mxu1 }
 0x282   : > { %1193 = vst [vmem:[%s2711_s19 + $0x18] sm:$0xff] %v1103_v16  ;;  %v1225_v31 = vsub.f32 %v1103_v16, %v1733_v25  ;;  %v1745_v16 = vld [vmem:[%s1853_s28 + $0x78] sm:$0xff] }
 0x283   : > { %v1256_v58 = vmul.f32 %v1224_v5, %v1224_v5 }
 0x284   : > { %v1257_v53 = vmul.f32 %v1225_v31, %v1225_v31  ;;  %v1107_v1 = vpop.f32.mrb[4].mxu1 }
 0x285   : > { %v1286_v17 = vadd.f32 %v1256_v58, %v1254_v47  ;;  %1194 = vst [vmem:[%s2711_s19 + $0x20] sm:$0xff] %v1107_v1  ;;  %v1226_v2 = vsub.f32 %v1107_v1, %v1734_v21  ;;  %v1109_v4 = vpop.f32.mrb[5].mxu1 }
 0x286   : > { %v1307_v60 = vadd.f32 %v1257_v53, %v1255_v35  ;;  %1195 = vst [vmem:[%s2711_s19 + $0x28] sm:$0xff] %v1109_v4  ;;  %v1227_v6 = vsub.f32 %v1109_v4, %v1735_v15  ;;  %v1746_v53 = vld [vmem:[%s1853_s28 + $0x80] sm:$0xff] }
 0x287   : > { %v1258_v9 = vmul.f32 %v1226_v2, %v1226_v2  ;;  %v1747_v2 = vld [vmem:[%s1853_s28 + $0x88] sm:$0xff] }
 0x288   : > { %v1259_v20 = vmul.f32 %v1227_v6, %v1227_v6  ;;  %v1113_v11 = vpop.f32.mrb[6].mxu1 }
 0x289   : > { %v1287_v19 = vadd.f32 %v1286_v17, %v1258_v9  ;;  %1196 = vst [vmem:[%s2711_s19 + $0x30] sm:$0xff] %v1113_v11  ;;  %v1228_v22 = vsub.f32 %v1113_v11, %v1736_v44  ;;  %v1115_v23 = vpop.f32.mrb[7].mxu1 }
 0x28a   : > { %v1308_v56 = vadd.f32 %v1307_v60, %v1259_v20  ;;  %1197 = vst [vmem:[%s2711_s19 + $0x38] sm:$0xff] %v1115_v23  ;;  %v1229_v28 = vsub.f32 %v1115_v23, %v1737_v24  ;;  %v1748_v20 = vld [vmem:[%s1853_s28 + $0x90] sm:$0xff] }
 0x28b   : > { %v1260_v29 = vmul.f32 %v1228_v22, %v1228_v22  ;;  %v1749_v22 = vld [vmem:[%s1853_s28 + $0x98] sm:$0xff] }
 0x28c   : > { %v1261_v33 = vmul.f32 %v1229_v28, %v1229_v28  ;;  %v1119_v41 = vpop.f32.mrb[8].mxu1 }
 0x28d   : > { %v1288_v42 = vadd.f32 %v1287_v19, %v1260_v29  ;;  %1198 = vst [vmem:[%s2711_s19 + $0x40] sm:$0xff] %v1119_v41  ;;  %v1230_v46 = vsub.f32 %v1119_v41, %v1738_v43  ;;  %v1121_v50 = vpop.f32.mrb[9].mxu1 }
 0x28e   : > { %v1309_v54 = vadd.f32 %v1308_v56, %v1261_v33  ;;  %1199 = vst [vmem:[%s2711_s19 + $0x48] sm:$0xff] %v1121_v50  ;;  %v1231_v45 = vsub.f32 %v1121_v50, %v1739_v13  ;;  %v1750_v33 = vld [vmem:[%s1853_s28 + $0xa0] sm:$0xff] }
 0x28f   : > { %v1262_v59 = vmul.f32 %v1230_v46, %v1230_v46  ;;  %v1751_v46 = vld [vmem:[%s1853_s28 + $0xa8] sm:$0xff] }
 0x290   : > { %v1263_v8 = vmul.f32 %v1231_v45, %v1231_v45  ;;  %v1125_v61 = vpop.f32.mrb[10].mxu1 }
 0x291   : > { %v1289_v18 = vadd.f32 %v1288_v42, %v1262_v59  ;;  %1200 = vst [vmem:[%s2711_s19 + $0x50] sm:$0xff] %v1125_v61  ;;  %v1232_v40 = vsub.f32 %v1125_v61, %v1740_v14  ;;  %v1127_v49 = vpop.f32.mrb[11].mxu1 }
 0x292   : > { %v1310_v38 = vadd.f32 %v1309_v54, %v1263_v8  ;;  %1201 = vst [vmem:[%s2711_s19 + $0x58] sm:$0xff] %v1127_v49  ;;  %v1233_v30 = vsub.f32 %v1127_v49, %v1741_v62  ;;  %v1752_v8 = vld [vmem:[%s1853_s28 + $0xb0] sm:$0xff] }
 0x293   : > { %v1264_v63 = vmul.f32 %v1232_v40, %v1232_v40  ;;  %v1753_v40 = vld [vmem:[%s1853_s28 + $0xb8] sm:$0xff] }
 0x294   : > { %v1265_v37 = vmul.f32 %v1233_v30, %v1233_v30  ;;  %v1131_v26 = vpop.f32.mrb[12].mxu1 }
 0x295   : > { %v1290_v32 = vadd.f32 %v1289_v18, %v1264_v63  ;;  %1202 = vst [vmem:[%s2711_s19 + $0x60] sm:$0xff] %v1131_v26  ;;  %v1234_v39 = vsub.f32 %v1131_v26, %v1742_v34  ;;  %v1133_v27 = vpop.f32.mrb[13].mxu1 }
 0x296   : > { %v1311_v52 = vadd.f32 %v1310_v38, %v1265_v37  ;;  %1203 = vst [vmem:[%s2711_s19 + $0x68] sm:$0xff] %v1133_v27  ;;  %v1235_v48 = vsub.f32 %v1133_v27, %v1743_v36  ;;  %v1754_v37 = vld [vmem:[%s1853_s28 + $0xc0] sm:$0xff] }
 0x297   : > { %v1266_v55 = vmul.f32 %v1234_v39, %v1234_v39  ;;  %v1755_v39 = vld [vmem:[%s1853_s28 + $0xc8] sm:$0xff] }
 0x298   : > { %v1267_v57 = vmul.f32 %v1235_v48, %v1235_v48  ;;  %v1137_v7 = vpop.f32.mrb[14].mxu1 }
 0x299   : > { %v1291_v3 = vadd.f32 %v1290_v32, %v1266_v55  ;;  %1204 = vst [vmem:[%s2711_s19 + $0x70] sm:$0xff] %v1137_v7  ;;  %v1236_v0 = vsub.f32 %v1137_v7, %v1744_v10  ;;  %v1139_v12 = vpop.f32.mrb[15].mxu1 }
 0x29a   : > { %v1312_v5 = vadd.f32 %v1311_v52, %v1267_v57  ;;  %1205 = vst [vmem:[%s2711_s19 + $0x78] sm:$0xff] %v1139_v12  ;;  %v1237_v25 = vsub.f32 %v1139_v12, %v1745_v16  ;;  %v1756_v57 = vld [vmem:[%s1853_s28 + $0xd0] sm:$0xff] }
 0x29b   : > { %v1268_v31 = vmul.f32 %v1236_v0, %v1236_v0  ;;  %v1757_v0 = vld [vmem:[%s1853_s28 + $0xd8] sm:$0xff] }
 0x29c   : > { %v1269_v47 = vmul.f32 %v1237_v25, %v1237_v25  ;;  %v1143_v58 = vpop.f32.mrb[16].mxu1 }
 0x29d   : > { %v1292_v35 = vadd.f32 %v1291_v3, %v1268_v31  ;;  %1206 = vst [vmem:[%s2711_s19 + $0x80] sm:$0xff] %v1143_v58  ;;  %v1238_v1 = vsub.f32 %v1143_v58, %v1746_v53  ;;  %v1145_v17 = vpop.f32.mrb[17].mxu1 }
 0x29e   : > { %v1313_v21 = vadd.f32 %v1312_v5, %v1269_v47  ;;  %1207 = vst [vmem:[%s2711_s19 + $0x88] sm:$0xff] %v1145_v17  ;;  %v1239_v4 = vsub.f32 %v1145_v17, %v1747_v2  ;;  %v1758_v47 = vld [vmem:[%s1853_s28 + $0xe0] sm:$0xff] }
 0x29f   : > { %v1270_v60 = vmul.f32 %v1238_v1, %v1238_v1  ;;  %v1759_v1 = vld [vmem:[%s1853_s28 + $0xe8] sm:$0xff] }
 0x2a0   : > { %v1271_v15 = vmul.f32 %v1239_v4, %v1239_v4  ;;  %v1149_v6 = vpop.f32.mrb[18].mxu1 }
 0x2a1   : > { %v1293_v9 = vadd.f32 %v1292_v35, %v1270_v60  ;;  %1208 = vst [vmem:[%s2711_s19 + $0x90] sm:$0xff] %v1149_v6  ;;  %v1240_v11 = vsub.f32 %v1149_v6, %v1748_v20  ;;  %v1151_v19 = vpop.f32.mrb[19].mxu1 }
 0x2a2   : > { %v1314_v44 = vadd.f32 %v1313_v21, %v1271_v15  ;;  %1209 = vst [vmem:[%s2711_s19 + $0x98] sm:$0xff] %v1151_v19  ;;  %v1241_v23 = vsub.f32 %v1151_v19, %v1749_v22  ;;  %v1760_v15 = vld [vmem:[%s1853_s28 + $0xf0] sm:$0xff] }
 0x2a3   : > { %v1272_v56 = vmul.f32 %v1240_v11, %v1240_v11  ;;  %v1761_v11 = vld [vmem:[%s1853_s28 + $0xf8] sm:$0xff] }
 0x2a4   : > { %v1273_v24 = vmul.f32 %v1241_v23, %v1241_v23  ;;  %v1155_v28 = vpop.f32.mrb[20].mxu1 }
 0x2a5   : > { %v1294_v29 = vadd.f32 %v1293_v9, %v1272_v56  ;;  %1210 = vst [vmem:[%s2711_s19 + $0xa0] sm:$0xff] %v1155_v28  ;;  %v1242_v41 = vsub.f32 %v1155_v28, %v1750_v33  ;;  %v1157_v42 = vpop.f32.mrb[21].mxu1 }
 0x2a6   : > { %v1315_v43 = vadd.f32 %v1314_v44, %v1273_v24  ;;  %1211 = vst [vmem:[%s2711_s19 + $0xa8] sm:$0xff] %v1157_v42  ;;  %v1243_v50 = vsub.f32 %v1157_v42, %v1751_v46 }
 0x2a7   : > { %v1274_v54 = vmul.f32 %v1242_v41, %v1242_v41 }
 0x2a8   : > { %v1275_v13 = vmul.f32 %v1243_v50, %v1243_v50  ;;  %v1161_v45 = vpop.f32.mrb[22].mxu1 }
 0x2a9   : > { %v1295_v59 = vadd.f32 %v1294_v29, %v1274_v54  ;;  %1212 = vst [vmem:[%s2711_s19 + $0xb0] sm:$0xff] %v1161_v45  ;;  %v1244_v61 = vsub.f32 %v1161_v45, %v1752_v8  ;;  %v1163_v18 = vpop.f32.mrb[23].mxu1 }
 0x2aa   : > { %v1316_v14 = vadd.f32 %v1315_v43, %v1275_v13  ;;  %1213 = vst [vmem:[%s2711_s19 + $0xb8] sm:$0xff] %v1163_v18  ;;  %v1245_v49 = vsub.f32 %v1163_v18, %v1753_v40 }
 0x2ab   : > { %v1276_v38 = vmul.f32 %v1244_v61, %v1244_v61 }
 0x2ac   : > { %v1277_v62 = vmul.f32 %v1245_v49, %v1245_v49  ;;  %v1167_v30 = vpop.f32.mrb[24].mxu1 }
 0x2ad   : > { %v1296_v63 = vadd.f32 %v1295_v59, %v1276_v38  ;;  %1214 = vst [vmem:[%s2711_s19 + $0xc0] sm:$0xff] %v1167_v30  ;;  %v1246_v26 = vsub.f32 %v1167_v30, %v1754_v37  ;;  %v1169_v32 = vpop.f32.mrb[25].mxu1 }
 0x2ae   : > { %v1317_v34 = vadd.f32 %v1316_v14, %v1277_v62  ;;  %1215 = vst [vmem:[%s2711_s19 + $0xc8] sm:$0xff] %v1169_v32  ;;  %v1247_v27 = vsub.f32 %v1169_v32, %v1755_v39 }
 0x2af   : > { %v1278_v52 = vmul.f32 %v1246_v26, %v1246_v26 }
 0x2b0   : > { %v1279_v36 = vmul.f32 %v1247_v27, %v1247_v27  ;;  %v1173_v48 = vpop.f32.mrb[26].mxu1 }
 0x2b1   : > { %v1297_v55 = vadd.f32 %v1296_v63, %v1278_v52  ;;  %1216 = vst [vmem:[%s2711_s19 + $0xd0] sm:$0xff] %v1173_v48  ;;  %v1248_v7 = vsub.f32 %v1173_v48, %v1756_v57  ;;  %v1175_v3 = vpop.f32.mrb[27].mxu1 }
 0x2b2   : > { %v1318_v10 = vadd.f32 %v1317_v34, %v1279_v36  ;;  %1217 = vst [vmem:[%s2711_s19 + $0xd8] sm:$0xff] %v1175_v3  ;;  %v1249_v12 = vsub.f32 %v1175_v3, %v1757_v0 }
 0x2b3   : > { %v1280_v5 = vmul.f32 %v1248_v7, %v1248_v7 }
 0x2b4   : > { %v1281_v16 = vmul.f32 %v1249_v12, %v1249_v12  ;;  %v1179_v25 = vpop.f32.mrb[28].mxu1 }
 0x2b5   : > { %v1298_v31 = vadd.f32 %v1297_v55, %v1280_v5  ;;  %1218 = vst [vmem:[%s2711_s19 + $0xe0] sm:$0xff] %v1179_v25  ;;  %v1250_v58 = vsub.f32 %v1179_v25, %v1758_v47  ;;  %v1181_v35 = vpop.f32.mrb[29].mxu1 }
 0x2b6   : > { %v1319_v53 = vadd.f32 %v1318_v10, %v1281_v16  ;;  %1219 = vst [vmem:[%s2711_s19 + $0xe8] sm:$0xff] %v1181_v35  ;;  %v1251_v17 = vsub.f32 %v1181_v35, %v1759_v1 }
 0x2b7   : > { %v1282_v21 = vmul.f32 %v1250_v58, %v1250_v58 }
 0x2b8   : > { %v1283_v2 = vmul.f32 %v1251_v17, %v1251_v17  ;;  %v1185_v4 = vpop.f32.mrb[30].mxu1 }
 0x2b9   : > { %v1299_v60 = vadd.f32 %v1298_v31, %v1282_v21  ;;  %1220 = vst [vmem:[%s2711_s19 + $0xf0] sm:$0xff] %v1185_v4  ;;  %v1252_v6 = vsub.f32 %v1185_v4, %v1760_v15  ;;  %v1187_v9 = vpop.f32.mrb[31].mxu1 }
 0x2ba   : > { %v1320_v20 = vadd.f32 %v1319_v53, %v1283_v2  ;;  %1221 = vst [vmem:[%s2711_s19 + $0xf8] sm:$0xff] %v1187_v9  ;;  %v1253_v19 = vsub.f32 %v1187_v9, %v1761_v11 }
 0x2bb   : > { %v1284_v44 = vmul.f32 %v1252_v6, %v1252_v6 }
 0x2bc   : > { %v1285_v22 = vmul.f32 %v1253_v19, %v1253_v19 }
 0x2bd   : > { %v1300_v23 = vadd.f32 %v1299_v60, %v1284_v44 }
 0x2be   : > { %v1321_v56 = vadd.f32 %v1320_v20, %v1285_v22 }
 0x2bf   : > { %v1301_v24 = vrot.slane %v1300_v23, 4 }
 0x2c0   : > { %v1322_v28 = vrot.slane %v1321_v56, 4 }
 0x2c1   : > { %v1302_v29 = vadd.f32 %v1301_v24, %v1300_v23 }
 0x2c2   : > { %v1323_v33 = vadd.f32 %v1322_v28, %v1321_v56 }
 0x2c3   : > { %v1303_v41 = vrot.slane %v1302_v29, 2 }
 0x2c4   : > { %v1324_v42 = vrot.slane %v1323_v33, 2 }
 0x2c5   : > { %v1304_v43 = vadd.f32 %v1303_v41, %v1302_v29 }
 0x2c6   : > { %v1325_v46 = vadd.f32 %v1324_v42, %v1323_v33 }
 0x2c7   : > { %v1305_v50 = vrot.slane %v1304_v43, 1 }
 0x2c8   : > { %v1326_v54 = vrot.slane %v1325_v46, 1 }
 0x2c9   : > { %v1306_v13 = vadd.f32 %v1305_v50, %v1304_v43 }
 0x2ca   : > { %v1327_v45 = vadd.f32 %v1326_v54, %v1325_v46 }
 0x2cc   : > { %v1328_v59 = vadd.f32 %v1327_v45, %v1306_v13 }
 0x2ce   : > { %1329 = vadd.xlane.f32.xlu0 %v1328_v59 }
 0x2d2   : > { %1376 = vadd.xlane.f32.xlu0 %v2540_v51 }
 0x35b   : > { %v1330_v8 = vpop.xlane.xlu0 %1329 }
 0x35c   : > { %1332 = vst.msk [vmem:[%s320_s20] sm:$0x1] %vm1331_vm5, %v1330_v8 }
 0x35f   : > { %v1377_v61 = vpop.xlane.xlu0 %1376 }
 0x360   : > { %1396 = vst.msk [vmem:[%s2674_s16 + $0x70] sm:$0xff] %vm1381_vm2, %v1377_v61 }
 0x361 PF: > { %s17_s23 = sadd.s32 1, %s1784_s23   ;;  %s2824_s21 = smov %s1780_s22 }
 0x362   : > { %p14_p5 = scmp.ge.s32.totalorder %s17_s23, 4   ;;  %s2825_s22 = smov %s2827_s24 }
 0x364   :  { %16 = sbr.rel (!%p14_p5) target bundleno = 2 (0x2), region = 90 }

</bundles_post_ra>
